<compile_context>
chip_gen: v5e
topology: v5e:2x2
jax: 0.10.0
libtpu: 0.0.40
codegen_flags: <defaults>
</compile_context>

<pallas_src>
import jax
import jax.numpy as jnp
from jax import lax
from jax.experimental import pallas as pl
from jax.experimental.pallas import tpu as pltpu

LANE = 128  # TPU lane width


# ----------------------------- Pallas kernel --------------------------------
def critic_mlp_kernel(x_ref, w1_ref, w2_ref, w3_ref, w4t_ref, b_ref,
                      out_ref, xpad_ref):
    f_in = x_ref.shape[1]
    f_pad = xpad_ref.shape[1]

    # Zero-pad the raw [tile_b, f_in] rows to f_pad lanes inside VMEM (cheap
    # VPU stores; avoids shipping a 128-lane-padded copy of x through HBM).
    if f_in == f_pad:
        x = x_ref[...].astype(jnp.bfloat16)
    else:
        xpad_ref[...] = jnp.zeros_like(xpad_ref)
        xpad_ref[:, :f_in] = x_ref[...]
        x = xpad_ref[...].astype(jnp.bfloat16)

    # fc1 / fc2 / fc3: bf16 MXU matmuls, f32 accumulation, f32 bias + ReLU.
    h = jnp.dot(x, w1_ref[...], preferred_element_type=jnp.float32)
    h = jnp.maximum(h + b_ref[0:1, :], 0.0)
    h = jnp.dot(h.astype(jnp.bfloat16), w2_ref[...],
                preferred_element_type=jnp.float32)
    h = jnp.maximum(h + b_ref[1:2, :], 0.0)
    h = jnp.dot(h.astype(jnp.bfloat16), w3_ref[...],
                preferred_element_type=jnp.float32)
    h = jnp.maximum(h + b_ref[2:3, :], 0.0)

    # Value head: w4t is [8, h_pad] (only row 0 is real).  Contract both last
    # dims (A @ B^T) -> lane-dense [8, tile_b] output tile; add scalar bias.
    v = lax.dot_general(w4t_ref[...], h.astype(jnp.bfloat16),
                        dimension_numbers=(((1,), (1,)), ((), ())),
                        preferred_element_type=jnp.float32)
    out_ref[...] = v + b_ref[3, 0]


# ------------------------ one-time parameter prep ----------------------------
def prepare_params(params, lane=LANE):
    """Hoisted out of the per-call forward: zero-pad fc weights to lane-aligned
    shapes, cast to bf16, store the value head transposed as an [8, h_pad] slab
    (row 0 real) and pack all biases into one (8, h_pad) f32 array
    (rows 0..2 = b1..b3, row 3 lane 0 = value-head bias).  Zero padding keeps
    the padded lanes exactly 0 through the ReLUs, so the math on real lanes is
    unchanged."""
    (w1, b1), (w2, b2), (w3, b3), (w4, b4) = params
    f_in, hidden = w1.shape
    f_pad = pl.cdiv(f_in, lane) * lane
    h_pad = pl.cdiv(hidden, lane) * lane

    def pad_w(w, rows, cols):
        out = jnp.zeros((rows, cols), jnp.bfloat16)
        return out.at[:w.shape[0], :w.shape[1]].set(w.astype(jnp.bfloat16))

    w4t = jnp.zeros((8, h_pad), jnp.bfloat16).at[0, :hidden].set(
        w4[:, 0].astype(jnp.bfloat16))
    biases = (jnp.zeros((8, h_pad), jnp.float32)
              .at[0, :hidden].set(b1)
              .at[1, :hidden].set(b2)
              .at[2, :hidden].set(b3)
              .at[3, 0].set(b4[0]))
    return dict(w1=pad_w(w1, f_pad, h_pad),
                w2=pad_w(w2, h_pad, h_pad),
                w3=pad_w(w3, h_pad, h_pad),
                w4t=w4t, biases=biases)


# ------------------------------ host wrapper ---------------------------------
def critic_forward_pallas(x, prep, tile_b=None):
    """Batched critic forward.  x: [B, input_size] f32 rows.  Returns [B, 1]."""
    B, f_in = x.shape
    f_pad, h_pad = prep["w1"].shape
    assert f_in <= f_pad

    if tile_b is None:
        # B <= 512: single fat grid step (amortize ~0.35 us/step overhead).
        # Larger B: 512-row tiles; >= 2 parallel steps also feed both v7x TCs.
        tile_b = B if B <= 512 else 512
    num_tiles = pl.cdiv(B, tile_b)
    b_pad = num_tiles * tile_b
    if b_pad != B:
        x = jnp.zeros((b_pad, f_in), x.dtype).at[:B].set(x)

    const = lambda i: (0, 0)  # weights/biases resident across the whole grid
    out = pl.pallas_call(
        critic_mlp_kernel,
        out_shape=jax.ShapeDtypeStruct((8, b_pad), jnp.float32),
        grid=(num_tiles,),
        in_specs=[
            pl.BlockSpec((tile_b, f_in), lambda i: (i, 0)),   # raw x rows
            pl.BlockSpec((f_pad, h_pad), const),              # fc1 weight (bf16)
            pl.BlockSpec((h_pad, h_pad), const),              # fc2 weight (bf16)
            pl.BlockSpec((h_pad, h_pad), const),              # fc3 weight (bf16)
            pl.BlockSpec((8, h_pad), const),                  # value head, transposed
            pl.BlockSpec((8, h_pad), const),                  # packed biases (f32)
        ],
        out_specs=pl.BlockSpec((8, tile_b), lambda i: (0, i)),
        scratch_shapes=[pltpu.VMEM((tile_b, f_pad), jnp.float32)],
        compiler_params=pltpu.CompilerParams(
            dimension_semantics=("parallel",)),
    )(x, prep["w1"], prep["w2"], prep["w3"], prep["w4t"], prep["biases"])

    # Row 0 of the [8, b_pad] slab holds the real values.
    return out[0, :B][:, None]


# --------------------------- parameter construction --------------------------
def init_linear(key, fan_in, fan_out):
    """nn.Linear-style init U(-1/sqrt(fan_in), 1/sqrt(fan_in)); weight stored as
    [fan_in, fan_out] (transposed vs. PyTorch)."""
    kw, kb = jax.random.split(key)
    bound = float(fan_in) ** -0.5
    w = jax.random.uniform(kw, (fan_in, fan_out), jnp.float32, -bound, bound)
    b = jax.random.uniform(kb, (fan_out,), jnp.float32, -bound, bound)
    return w, b


# ------------------------ batched observation assembly -----------------------
def assemble_inputs(positions, statuses, rewards):
    """Vectorized equivalent of the per-agent obs-dict concat/flatten glue.
    positions: [B, n_agents, 3, 3]; statuses: [B, n_agents]; rewards: [B].
    Returns [B, n_agents*10 + 1]."""
    B, n_agents = statuses.shape
    pos_flat = positions.reshape(B, n_agents, -1)                          # [B,A,9]
    per_agent = jnp.concatenate([pos_flat, statuses[..., None]], axis=-1)  # [B,A,10]
    x = per_agent.reshape(B, -1)
    return jnp.concatenate([x, rewards[:, None]], axis=-1)                 # [B,10A+1]
    # TODO(synk): gym-spaces obs-dict introspection from __init__ is host-side
    # Python; the per-agent layout (Box(3,3) + Discrete) is fixed here.


# ----------------------------------- main ------------------------------------
if __name__ == "__main__":
    # Per agent: Box(3,3) -> 9 floats + Discrete -> 1 float = 10.
    n_agents = 3
    single_agent_obs_size = 10
    hidden_size = 256                                    # module default
    input_size = single_agent_obs_size * n_agents + 1    # 31
    B = 256                                              # rollout batch

    key = jax.random.PRNGKey(0)
    k_pos, k_stat, k_rew, k1, k2, k3, k4 = jax.random.split(key, 7)

    positions = jax.random.normal(k_pos, (B, n_agents, 3, 3), jnp.float32)
    statuses = jax.random.randint(k_stat, (B, n_agents), 0, 4).astype(jnp.float32)
    rewards = jax.random.normal(k_rew, (B,), jnp.float32)

    params = (
        init_linear(k1, input_size, hidden_size),    # fc1
        init_linear(k2, hidden_size, hidden_size),   # fc2
        init_linear(k3, hidden_size, hidden_size),   # fc3
        init_linear(k4, hidden_size, 1),             # value_head
    )
    prep = prepare_params(params)                    # one-time pad + bf16 cast

    x = assemble_inputs(positions, statuses, rewards)
    assert x.shape == (B, input_size)

    fwd = jax.jit(critic_forward_pallas)
    values = jax.block_until_ready(fwd(x, prep))
    assert values.shape == (B, 1)

    # f32 reference (kernel uses bf16 weights/activations -> loose tolerance).
    ref = x
    for i, (w, b) in enumerate(params):
        ref = jnp.dot(ref, w) + b[None, :]
        if i < 3:
            ref = jnp.maximum(ref, 0.0)
    max_err = float(jnp.max(jnp.abs(values - ref)))
    assert jnp.allclose(values, ref, atol=2e-2, rtol=2e-2), max_err

    print("KERNEL_OK")
</pallas_src>

<mosaic_0001>
module attributes {stable_mosaic.version = 11 : i64} {
  func.func @critic_mlp_kernel(%arg0: i32, %arg1: memref<256x31xf32, #tpu.memory_space<vmem>>, %arg2: memref<128x256xbf16, #tpu.memory_space<vmem>>, %arg3: memref<256x256xbf16, #tpu.memory_space<vmem>>, %arg4: memref<256x256xbf16, #tpu.memory_space<vmem>>, %arg5: memref<8x256xbf16, #tpu.memory_space<vmem>>, %arg6: memref<8x256xf32, #tpu.memory_space<vmem>>, %arg7: memref<8x256xf32, #tpu.memory_space<vmem>>, %arg8: memref<256x128xf32, #tpu.memory_space<vmem>>) attributes {dimension_semantics = [#tpu.dimension_semantics<parallel>], iteration_bounds = array<i64: 1>, scalar_prefetch = 0 : i64, scratch_operands = 1 : i64, tpu.core_type = #tpu.core_type<tc>, window_params = [{transform_indices = @transform_0, window_bounds = array<i64: 256, 31>}, {pipeline_mode = #tpu.pipeline_mode<synchronous>, transform_indices = @transform_1, window_bounds = array<i64: 128, 256>}, {pipeline_mode = #tpu.pipeline_mode<synchronous>, transform_indices = @transform_2, window_bounds = array<i64: 256, 256>}, {pipeline_mode = #tpu.pipeline_mode<synchronous>, transform_indices = @transform_3, window_bounds = array<i64: 256, 256>}, {pipeline_mode = #tpu.pipeline_mode<synchronous>, transform_indices = @transform_4, window_bounds = array<i64: 8, 256>}, {pipeline_mode = #tpu.pipeline_mode<synchronous>, transform_indices = @transform_5, window_bounds = array<i64: 8, 256>}, {transform_indices = @transform_6, window_bounds = array<i64: 8, 256>}]} {
    %cst = arith.constant 0.000000e+00 : f32
    %0 = vector.broadcast %cst : f32 to vector<256x128xf32>
    %c0 = arith.constant 0 : index
    %c0_0 = arith.constant 0 : index
    %1 = vector.load %arg8[%c0, %c0_0] : memref<256x128xf32, #tpu.memory_space<vmem>>, vector<256x128xf32>
    tpu.vector_store %arg8[%c0, %c0_0], %0 {strides = array<i32>} : memref<256x128xf32, #tpu.memory_space<vmem>>, vector<256x128xf32>,
    %c0_1 = arith.constant 0 : index
    %c0_2 = arith.constant 0 : index
    %2 = vector.load %arg1[%c0_1, %c0_2] : memref<256x31xf32, #tpu.memory_space<vmem>>, vector<256x31xf32>
    %c0_3 = arith.constant 0 : index
    %c0_4 = arith.constant 0 : index
    %3 = vector.load %arg8[%c0_3, %c0_4] : memref<256x128xf32, #tpu.memory_space<vmem>>, vector<256x31xf32>
    tpu.vector_store %arg8[%c0_3, %c0_4], %2 {strides = array<i32>} : memref<256x128xf32, #tpu.memory_space<vmem>>, vector<256x31xf32>,
    %c0_5 = arith.constant 0 : index
    %c0_6 = arith.constant 0 : index
    %4 = vector.load %arg8[%c0_5, %c0_6] : memref<256x128xf32, #tpu.memory_space<vmem>>, vector<256x128xf32>
    %5 = arith.truncf %4 : vector<256x128xf32> to vector<256x128xbf16>
    %c0_7 = arith.constant 0 : index
    %c0_8 = arith.constant 0 : index
    %6 = vector.load %arg2[%c0_7, %c0_8] : memref<128x256xbf16, #tpu.memory_space<vmem>>, vector<128x256xbf16>
    %cst_9 = arith.constant dense<0.000000e+00> : vector<256x256xf32>
    %7 = tpu.matmul %5, %6, %cst_9 {dimension_numbers = #tpu.dot_dimension_numbers<[1], [0], [0], [1], [0, 0, 1, 1], [], []>} : vector<256x128xbf16>, vector<128x256xbf16>, vector<256x256xf32> -> vector<256x256xf32>
    %c0_10 = arith.constant 0 : index
    %c0_11 = arith.constant 0 : index
    %8 = vector.load %arg6[%c0_10, %c0_11] : memref<8x256xf32, #tpu.memory_space<vmem>>, vector<1x256xf32>
    %9 = vector.broadcast %8 : vector<1x256xf32> to vector<256x256xf32>
    %10 = arith.addf %7, %9 : vector<256x256xf32>
    %cst_12 = arith.constant 0.000000e+00 : f32
    %11 = vector.broadcast %cst_12 : f32 to vector<256x256xf32>
    %12 = arith.maximumf %10, %11 : vector<256x256xf32>
    %13 = arith.truncf %12 : vector<256x256xf32> to vector<256x256xbf16>
    %c0_13 = arith.constant 0 : index
    %c0_14 = arith.constant 0 : index
    %14 = vector.load %arg3[%c0_13, %c0_14] : memref<256x256xbf16, #tpu.memory_space<vmem>>, vector<256x256xbf16>
    %cst_15 = arith.constant dense<0.000000e+00> : vector<256x256xf32>
    %15 = tpu.matmul %13, %14, %cst_15 {dimension_numbers = #tpu.dot_dimension_numbers<[1], [0], [0], [1], [0, 0, 1, 1], [], []>} : vector<256x256xbf16>, vector<256x256xbf16>, vector<256x256xf32> -> vector<256x256xf32>
    %c1 = arith.constant 1 : index
    %c0_16 = arith.constant 0 : index
    %16 = vector.load %arg6[%c1, %c0_16] : memref<8x256xf32, #tpu.memory_space<vmem>>, vector<1x256xf32>
    %17 = vector.broadcast %16 : vector<1x256xf32> to vector<256x256xf32>
    %18 = arith.addf %15, %17 : vector<256x256xf32>
    %cst_17 = arith.constant 0.000000e+00 : f32
    %19 = vector.broadcast %cst_17 : f32 to vector<256x256xf32>
    %20 = arith.maximumf %18, %19 : vector<256x256xf32>
    %21 = arith.truncf %20 : vector<256x256xf32> to vector<256x256xbf16>
    %c0_18 = arith.constant 0 : index
    %c0_19 = arith.constant 0 : index
    %22 = vector.load %arg4[%c0_18, %c0_19] : memref<256x256xbf16, #tpu.memory_space<vmem>>, vector<256x256xbf16>
    %cst_20 = arith.constant dense<0.000000e+00> : vector<256x256xf32>
    %23 = tpu.matmul %21, %22, %cst_20 {dimension_numbers = #tpu.dot_dimension_numbers<[1], [0], [0], [1], [0, 0, 1, 1], [], []>} : vector<256x256xbf16>, vector<256x256xbf16>, vector<256x256xf32> -> vector<256x256xf32>
    %c2 = arith.constant 2 : index
    %c0_21 = arith.constant 0 : index
    %24 = vector.load %arg6[%c2, %c0_21] : memref<8x256xf32, #tpu.memory_space<vmem>>, vector<1x256xf32>
    %25 = vector.broadcast %24 : vector<1x256xf32> to vector<256x256xf32>
    %26 = arith.addf %23, %25 : vector<256x256xf32>
    %cst_22 = arith.constant 0.000000e+00 : f32
    %27 = vector.broadcast %cst_22 : f32 to vector<256x256xf32>
    %28 = arith.maximumf %26, %27 : vector<256x256xf32>
    %c0_23 = arith.constant 0 : index
    %c0_24 = arith.constant 0 : index
    %29 = vector.load %arg5[%c0_23, %c0_24] : memref<8x256xbf16, #tpu.memory_space<vmem>>, vector<8x256xbf16>
    %30 = arith.truncf %28 : vector<256x256xf32> to vector<256x256xbf16>
    %cst_25 = arith.constant dense<0.000000e+00> : vector<8x256xf32>
    %31 = tpu.matmul %29, %30, %cst_25 {dimension_numbers = #tpu.dot_dimension_numbers<[1], [1], [0], [0], [0, 0, 1, 0], [], []>} : vector<8x256xbf16>, vector<256x256xbf16>, vector<8x256xf32> -> vector<8x256xf32>
    %c3 = arith.constant 3 : index
    %c0_26 = arith.constant 0 : index
    %32 = vector.load %arg6[%c3, %c0_26] : memref<8x256xf32, #tpu.memory_space<vmem>>, vector<1x1xf32>
    %33 = vector.extract %32[0, 0] : f32 from vector<1x1xf32>
    %34 = vector.broadcast %33 : f32 to vector<8x256xf32>
    %35 = arith.addf %31, %34 : vector<8x256xf32>
    %c0_27 = arith.constant 0 : index
    %c0_28 = arith.constant 0 : index
    %36 = vector.load %arg7[%c0_27, %c0_28] : memref<8x256xf32, #tpu.memory_space<vmem>>, vector<8x256xf32>
    tpu.vector_store %arg7[%c0_27, %c0_28], %35 {strides = array<i32>} : memref<8x256xf32, #tpu.memory_space<vmem>>, vector<8x256xf32>,
    return
  }
  func.func @transform_0(%arg0: i32) -> (i32, i32) {
    %c0_i32 = arith.constant 0 : i32
    %c0_i32_0 = arith.constant 0 : i32
    return %arg0, %c0_i32 : i32, i32
  }
  func.func @transform_1(%arg0: i32) -> (i32, i32) {
    %c0_i32 = arith.constant 0 : i32
    %c0_i32_0 = arith.constant 0 : i32
    %c0_i32_1 = arith.constant 0 : i32
    return %c0_i32, %c0_i32_0 : i32, i32
  }
  func.func @transform_2(%arg0: i32) -> (i32, i32) {
    %c0_i32 = arith.constant 0 : i32
    %c0_i32_0 = arith.constant 0 : i32
    %c0_i32_1 = arith.constant 0 : i32
    return %c0_i32, %c0_i32_0 : i32, i32
  }
  func.func @transform_3(%arg0: i32) -> (i32, i32) {
    %c0_i32 = arith.constant 0 : i32
    %c0_i32_0 = arith.constant 0 : i32
    %c0_i32_1 = arith.constant 0 : i32
    return %c0_i32, %c0_i32_0 : i32, i32
  }
  func.func @transform_4(%arg0: i32) -> (i32, i32) {
    %c0_i32 = arith.constant 0 : i32
    %c0_i32_0 = arith.constant 0 : i32
    %c0_i32_1 = arith.constant 0 : i32
    return %c0_i32, %c0_i32_0 : i32, i32
  }
  func.func @transform_5(%arg0: i32) -> (i32, i32) {
    %c0_i32 = arith.constant 0 : i32
    %c0_i32_0 = arith.constant 0 : i32
    %c0_i32_1 = arith.constant 0 : i32
    return %c0_i32, %c0_i32_0 : i32, i32
  }
  func.func @transform_6(%arg0: i32) -> (i32, i32) {
    %c0_i32 = arith.constant 0 : i32
    %c0_i32_0 = arith.constant 0 : i32
    return %c0_i32, %arg0 : i32, i32
  }
}

</mosaic_0001>

<bundles_post_ra>
// kernel: critic_forward_pallas.1
= control target key start
LH: loop header
LB: loop body
LE: loop exit
PB: predicated region body
PF: predicated region fallthrough
CT: control target
= control target key end

     0   :  { %11 = vsyncpa [#allocation4], 0  ;;  %s3427_s0 = inlined_call_operand.vmem [shape: f32[256,31], index: 0, kind: input, shape index: {}]   ;;  %s3428_s1 = inlined_call_operand.hbm [shape: bf16[128,256], index: 1, kind: input, shape index: {}]   ;;  %s3429_s2 = inlined_call_operand.vmem [shape: bf16[256,256], index: 2, kind: input, shape index: {}]   ;;  %s3430_s3 = inlined_call_operand.hbm [shape: bf16[256,256], index: 3, kind: input, shape index: {}]   ;;  %s3431_s4 = inlined_call_operand.vmem [shape: bf16[8,256], index: 4, kind: input, shape index: {}]   ;;  %s3432_s5 = inlined_call_operand.vmem [shape: f32[8,256], index: 5, kind: input, shape index: {}]   ;;  %s3433_s6 = inlined_call_operand.vmem [shape: f32[8,256], index: 6, kind: output, shape index: {}]  }
   0x1   :  { %s19_s23 = sshll.u32 %s3428_s1, 4  ;;  %s20_s23 = int_to_ptr.hbm [resolvable:$true] %s19_s23 }
   0x2   :  { %12 = vsyncpa [#allocation6], 0  ;;  %s2426_s24 = smov [#allocation3]   ;;  %s34_s28 = sshll.u32 %s3430_s3, 4  ;;  %s35_s28 = int_to_ptr.hbm [resolvable:$true] %s34_s28 }
   0x3   :  { %s21_s25 = sshll.u32 %s2426_s24, 4  ;;  %s2427_s29 = smov 128   ;;  %s22_s25 = int_to_ptr.vmem [resolvable:$true] %s21_s25 }
   0x4   :  { %s2428_s30 = smov 8   ;;  %s2429_s7 = smov [#allocation5]  }
   0x5   :  { %27 = dma.hbm_to_vmem [thread:$0]  %s20_s23, 2048, %s22_s25, [#allocation4], %s2427_s29, %s2427_s29, %s2428_s30  }
   0x6   :  { %s36_s8 = sshll.u32 %s2429_s7, 4  ;;  %s37_s8 = int_to_ptr.vmem [resolvable:$true] %s36_s8 }
   0x7   :  { %42 = dma.hbm_to_vmem [thread:$0]  %s35_s28, 4096, %s37_s8, [#allocation6], %s2427_s29, %s2427_s29, %s2428_s30  }
   0x8   :  { %2422 = dma.done.wait [#allocation4], 2048  }
   0x9   :  { %2423 = vsyncadd [#allocation4], 4294965248 }
   0xa   :  { %2424 = dma.done.wait [#allocation6], 4096  }
   0xb   :  { %2425 = vsyncadd [#allocation6], 4294963200  ;;  %v2430_v0 = vmov 0.0   ;;  %v2007_v1 = vld [vmem:[#allocation3 + $0x70] sm:$0xf]  ;;  %vm119_vm0 = vcmask 252928  }
   0xc   :  { %55 = vst [vmem:[#allocation2] sm:$0xff] %v2430_v0  ;;  %v2286_v2 = vld [vmem:[#allocation3 + $0x74] sm:$0xf0]  ;;  %v2285_v3 = vld [vmem:[#allocation3 + $0x74] sm:$0xf]  ;;  %v87_v23 = vld [vmem:[%s3427_s0] sm:$0xff] }
   0xd   :  { %56 = vst [vmem:[#allocation2 + $0x8] sm:$0xff] %v2430_v0  ;;  %v2008_v4 = vor.u32 %v2286_v2, %v2007_v1  ;;  %v2009_v5 = vld [vmem:[#allocation3 + $0x78] sm:$0xf0]  ;;  %v1999_v6 = vld [vmem:[#allocation3 + $0x60] sm:$0xf]  ;;  %v88_v25 = vld [vmem:[%s3427_s0 + $0x8] sm:$0xff] }
   0xe   :  { %57 = vst [vmem:[#allocation2 + $0x10] sm:$0xff] %v2430_v0  ;;  %v2284_v7 = vld [vmem:[#allocation3 + $0x64] sm:$0xf0]  ;;  %v2012_v8 = vor.u32 %v2285_v3, %v2009_v5  ;;  %v2283_v9 = vld [vmem:[#allocation3 + $0x64] sm:$0xf]  ;;  %v89_v54 = vld [vmem:[%s3427_s0 + $0x10] sm:$0xff] }
   0xf   :  { %58 = vst [vmem:[#allocation2 + $0x18] sm:$0xff] %v2430_v0  ;;  %v2001_v10 = vld [vmem:[#allocation3 + $0x68] sm:$0xf0]  ;;  %302 = vmatpush.bf16.msra.mxu0 %v2008_v4  ;;  %v2000_v11 = vor.u32 %v2284_v7, %v1999_v6  ;;  %2351 = vmatpush.bf16.msra.mxu2 %v2008_v4  ;;  %v1991_v13 = vld [vmem:[#allocation3 + $0x50] sm:$0xf]  ;;  %v90_v55 = vld [vmem:[%s3427_s0 + $0x18] sm:$0xff] }
  0x10   :  { %59 = vst [vmem:[#allocation2 + $0x20] sm:$0xff] %v2430_v0  ;;  %391 = vmatpush.bf16.msra.mxu1 %v2012_v8  ;;  %v2004_v12 = vor.u32 %v2283_v9, %v2001_v10  ;;  %v2282_v14 = vld [vmem:[#allocation3 + $0x54] sm:$0xf0]  ;;  %2359 = vmatpush.bf16.msra.mxu3 %v2012_v8  ;;  %v2281_v15 = vld [vmem:[#allocation3 + $0x54] sm:$0xf]  ;;  %v91_v56 = vld [vmem:[%s3427_s0 + $0x20] sm:$0xff] }
  0x11   :  { %60 = vst [vmem:[#allocation2 + $0x28] sm:$0xff] %v2430_v0  ;;  %v1993_v16 = vld [vmem:[#allocation3 + $0x58] sm:$0xf0]  ;;  %v1992_v17 = vor.u32 %v2282_v14, %v1991_v13  ;;  %v1983_v19 = vld [vmem:[#allocation3 + $0x40] sm:$0xf]  ;;  %v92_v57 = vld [vmem:[%s3427_s0 + $0x28] sm:$0xff] }
  0x12   :  { %v1996_v18 = vor.u32 %v2281_v15, %v1993_v16  ;;  %v2280_v20 = vld [vmem:[#allocation3 + $0x44] sm:$0xf0]  ;;  %v2279_v21 = vld [vmem:[#allocation3 + $0x44] sm:$0xf]  ;;  %v1985_v22 = vld [vmem:[#allocation3 + $0x48] sm:$0xf0] }
  0x13   :  { %303 = vmatpush.bf16.msra.mxu0 %v2000_v11  ;;  %2352 = vmatpush.bf16.msra.mxu2 %v2000_v11  ;;  %61 = vst [vmem:[#allocation2 + $0x30] sm:$0xff] %v2430_v0  ;;  %v1984_v24 = vor.u32 %v2280_v20, %v1983_v19  ;;  %v1988_v26 = vor.u32 %v2279_v21, %v1985_v22  ;;  %v1975_v27 = vld [vmem:[#allocation3 + $0x30] sm:$0xf]  ;;  %v2278_v28 = vld [vmem:[#allocation3 + $0x34] sm:$0xf0]  ;;  %v95_v1 = vld [vmem:[%s3427_s0 + $0x40] sm:$0xff] }
  0x14   :  { %392 = vmatpush.bf16.msra.mxu1 %v2004_v12  ;;  %2360 = vmatpush.bf16.msra.mxu3 %v2004_v12  ;;  %120 = vst.msk [vmem:[#allocation2] sm:$0xff] %vm119_vm0, %v87_v23  ;;  %v2277_v29 = vld [vmem:[#allocation3 + $0x34] sm:$0xf]  ;;  %v1977_v30 = vld [vmem:[#allocation3 + $0x38] sm:$0xf0]  ;;  %v1976_v31 = vor.u32 %v2278_v28, %v1975_v27  ;;  %v96_v2 = vld [vmem:[%s3427_s0 + $0x48] sm:$0xff] }
  0x15   :  { %121 = vst.msk [vmem:[#allocation2 + $0x8] sm:$0xff] %vm119_vm0, %v88_v25  ;;  %v1980_v32 = vor.u32 %v2277_v29, %v1977_v30  ;;  %v1967_v33 = vld [vmem:[#allocation3 + $0x20] sm:$0xf]  ;;  %v2276_v34 = vld [vmem:[#allocation3 + $0x24] sm:$0xf0]  ;;  %v93_v58 = vld [vmem:[%s3427_s0 + $0x30] sm:$0xff] }
  0x16   :  { %62 = vst [vmem:[#allocation2 + $0x38] sm:$0xff] %v2430_v0  ;;  %v2275_v35 = vld [vmem:[#allocation3 + $0x24] sm:$0xf]  ;;  %v1969_v36 = vld [vmem:[#allocation3 + $0x28] sm:$0xf0]  ;;  %v1968_v37 = vor.u32 %v2276_v34, %v1967_v33  ;;  %v94_v59 = vld [vmem:[%s3427_s0 + $0x38] sm:$0xff] }
  0x17   :  { %304 = vmatpush.bf16.msra.mxu0 %v1992_v17  ;;  %2353 = vmatpush.bf16.msra.mxu2 %v1992_v17  ;;  %63 = vst [vmem:[#allocation2 + $0x40] sm:$0xff] %v2430_v0  ;;  %v1972_v38 = vor.u32 %v2275_v35, %v1969_v36  ;;  %v1959_v39 = vld [vmem:[#allocation3 + $0x10] sm:$0xf]  ;;  %v2274_v40 = vld [vmem:[#allocation3 + $0x14] sm:$0xf0]  ;;  %v111_v9 = vld [vmem:[%s3427_s0 + $0xc0] sm:$0xff] }
  0x18   :  { %393 = vmatpush.bf16.msra.mxu1 %v1996_v18  ;;  %2361 = vmatpush.bf16.msra.mxu3 %v1996_v18  ;;  %64 = vst [vmem:[#allocation2 + $0x48] sm:$0xff] %v2430_v0  ;;  %v2273_v41 = vld [vmem:[#allocation3 + $0x14] sm:$0xf]  ;;  %v1961_v42 = vld [vmem:[#allocation3 + $0x18] sm:$0xf0]  ;;  %v1960_v43 = vor.u32 %v2274_v40, %v1959_v39  ;;  %v112_v10 = vld [vmem:[%s3427_s0 + $0xc8] sm:$0xff] }
  0x19   :  { %65 = vst [vmem:[#allocation2 + $0x50] sm:$0xff] %v2430_v0  ;;  %v1964_v44 = vor.u32 %v2273_v41, %v1961_v42  ;;  %v1951_v45 = vld [vmem:[#allocation3] sm:$0xf]  ;;  %v2272_v46 = vld [vmem:[#allocation3 + $0x4] sm:$0xf0]  ;;  %v109_v63 = vld [vmem:[%s3427_s0 + $0xb0] sm:$0xff] }
  0x1a   :  { %66 = vst [vmem:[#allocation2 + $0x58] sm:$0xff] %v2430_v0  ;;  %v2271_v47 = vld [vmem:[#allocation3 + $0x4] sm:$0xf]  ;;  %v1953_v48 = vld [vmem:[#allocation3 + $0x8] sm:$0xf0]  ;;  %v1952_v49 = vor.u32 %v2272_v46, %v1951_v45  ;;  %v97_v11 = vld [vmem:[%s3427_s0 + $0x50] sm:$0xff] }
  0x1b   :  { %305 = vmatpush.bf16.msra.mxu0 %v1984_v24  ;;  %2354 = vmatpush.bf16.msra.mxu2 %v1984_v24  ;;  %67 = vst [vmem:[#allocation2 + $0x60] sm:$0xff] %v2430_v0  ;;  %v152_v50 = vld [vmem:[#allocation2] sm:$0xff]  ;;  %v1956_v52 = vor.u32 %v2271_v47, %v1953_v48  ;;  %v98_v12 = vld [vmem:[%s3427_s0 + $0x58] sm:$0xff]  ;;  %v2301_v19 = vld [vmem:[%s3429_s2 + $0x74] sm:$0xf] }
  0x1c   :  { %394 = vmatpush.bf16.msra.mxu1 %v1988_v26  ;;  %2362 = vmatpush.bf16.msra.mxu3 %v1988_v26  ;;  %68 = vst [vmem:[#allocation2 + $0x68] sm:$0xff] %v2430_v0  ;;  %v153_v51 = vld [vmem:[#allocation2 + $0x8] sm:$0xff]  ;;  %v2074_v20 = vld [vmem:[%s3429_s2 + $0x78] sm:$0xf0]  ;;  %v2317_v21 = vld [vmem:[%s3429_s2 + $0xf4] sm:$0xf] }
  0x1d   :  { %69 = vst [vmem:[#allocation2 + $0x70] sm:$0xff] %v2430_v0  ;;  %v184_v53 = vpack.c.bf16 %v153_v51, %v152_v50  ;;  %v2077_v22 = vor.u32 %v2301_v19, %v2074_v20  ;;  %v2138_v23 = vld [vmem:[%s3429_s2 + $0xf8] sm:$0xf0]  ;;  %v113_v24 = vld [vmem:[%s3427_s0 + $0xd0] sm:$0xff]  ;;  %v99_v27 = vld [vmem:[%s3427_s0 + $0x60] sm:$0xff] }
  0x1e   :  { %70 = vst [vmem:[#allocation2 + $0x78] sm:$0xff] %v2430_v0  ;;  %v114_v25 = vld [vmem:[%s3427_s0 + $0xd8] sm:$0xff]  ;;  %v2141_v26 = vor.u32 %v2317_v21, %v2138_v23  ;;  %v100_v28 = vld [vmem:[%s3427_s0 + $0x68] sm:$0xff]  ;;  %v2299_v35 = vld [vmem:[%s3429_s2 + $0x64] sm:$0xf] }
  0x1f   :  { %306 = vmatpush.bf16.msra.mxu0 %v1976_v31  ;;  %2355 = vmatpush.bf16.msra.mxu2 %v1976_v31  ;;  %71 = vst [vmem:[#allocation2 + $0x80] sm:$0xff] %v2430_v0  ;;  %v2066_v36 = vld [vmem:[%s3429_s2 + $0x68] sm:$0xf0]  ;;  %v115_v40 = vld [vmem:[%s3427_s0 + $0xe0] sm:$0xff]  ;;  %v101_v45 = vld [vmem:[%s3427_s0 + $0x70] sm:$0xff] }
  0x20   :  { %395 = vmatpush.bf16.msra.mxu1 %v1980_v32  ;;  %2363 = vmatpush.bf16.msra.mxu3 %v1980_v32  ;;  %72 = vst [vmem:[#allocation2 + $0x88] sm:$0xff] %v2430_v0  ;;  %v2130_v39 = vld [vmem:[%s3429_s2 + $0xe8] sm:$0xf0]  ;;  %v2136_v47 = vld [vmem:[%s3429_s2 + $0xf0] sm:$0xf] }
  0x21   :  { %73 = vst [vmem:[#allocation2 + $0x90] sm:$0xff] %v2430_v0  ;;  %v116_v41 = vld [vmem:[%s3427_s0 + $0xe8] sm:$0xff]  ;;  %v2318_v48 = vld [vmem:[%s3429_s2 + $0xf4] sm:$0xf0]  ;;  %v2104_v23 = vld [vmem:[%s3429_s2 + $0xb0] sm:$0xf] }
  0x22   :  { %74 = vst [vmem:[#allocation2 + $0x98] sm:$0xff] %v2430_v0  ;;  %v2137_v50 = vor.u32 %v2318_v48, %v2136_v47  ;;  %v2294_v19 = vld [vmem:[%s3429_s2 + $0x34] sm:$0xf0]  ;;  %v2016_v47 = vld [vmem:[%s3429_s2] sm:$0xf] }
  0x23   :  { %307 = vmatpush.bf16.msra.mxu0 %v1968_v37  ;;  %2356 = vmatpush.bf16.msra.mxu2 %v1968_v37  ;;  %75 = vst [vmem:[#allocation2 + $0xa0] sm:$0xff] %v2430_v0  ;;  %v2315_v37 = vld [vmem:[%s3429_s2 + $0xe4] sm:$0xf]  ;;  %v2288_v48 = vld [vmem:[%s3429_s2 + $0x4] sm:$0xf0] }
  0x24   :  { %396 = vmatpush.bf16.msra.mxu1 %v1972_v38  ;;  %2364 = vmatpush.bf16.msra.mxu3 %v1972_v38  ;;  %76 = vst [vmem:[#allocation2 + $0xa8] sm:$0xff] %v2430_v0  ;;  %v2069_v38 = vor.u32 %v2299_v35, %v2066_v36  ;;  %v2133_v42 = vor.u32 %v2315_v37, %v2130_v39  ;;  %v2122_v37 = vld [vmem:[%s3429_s2 + $0xd8] sm:$0xf0]  ;;  %v2024_v39 = vld [vmem:[%s3429_s2 + $0x10] sm:$0xf] }
  0x25   :  { %77 = vst [vmem:[#allocation2 + $0xb0] sm:$0xff] %v2430_v0 }
  0x26   :  { %78 = vst [vmem:[#allocation2 + $0xb8] sm:$0xff] %v2430_v0 }
  0x27   :  { %308 = vmatpush.bf16.msra.mxu0 %v1960_v43  ;;  %2357 = vmatpush.bf16.msra.mxu2 %v1960_v43  ;;  %79 = vst [vmem:[#allocation2 + $0xc0] sm:$0xff] %v2430_v0  ;;  %v2072_v43 = vld [vmem:[%s3429_s2 + $0x70] sm:$0xf] }
  0x28   :  { %397 = vmatpush.bf16.msra.mxu1 %v1964_v44  ;;  %2365 = vmatpush.bf16.msra.mxu3 %v1964_v44  ;;  %80 = vst [vmem:[#allocation2 + $0xc8] sm:$0xff] %v2430_v0  ;;  %v2302_v44 = vld [vmem:[%s3429_s2 + $0x74] sm:$0xf0] }
  0x29   :  { %81 = vst [vmem:[#allocation2 + $0xd0] sm:$0xff] %v2430_v0  ;;  %v2073_v46 = vor.u32 %v2302_v44, %v2072_v43  ;;  %v2306_v43 = vld [vmem:[%s3429_s2 + $0x94] sm:$0xf0] }
  0x2a   :  { %82 = vst [vmem:[#allocation2 + $0xd8] sm:$0xff] %v2430_v0 }
  0x2b   :  { %309 = vmatpush.bf16.msra.mxu0 %v1952_v49  ;;  %2358 = vmatpush.bf16.msra.mxu2 %v1952_v49  ;;  %83 = vst [vmem:[#allocation2 + $0xe0] sm:$0xff] %v2430_v0  ;;  %v102_v49 = vld [vmem:[%s3427_s0 + $0x78] sm:$0xff] }
  0x2c   :  { %398 = vmatpush.bf16.msra.mxu1 %v1956_v52  ;;  %2366 = vmatpush.bf16.msra.mxu3 %v1956_v52  ;;  %84 = vst [vmem:[#allocation2 + $0xe8] sm:$0xff] %v2430_v0 }
  0x2d   :  { %85 = vst [vmem:[#allocation2 + $0xf0] sm:$0xff] %v2430_v0 }
  0x2e   :  { %310 = vmatmul.bf16.vlgmr.msra.gmra.mxu0 %v184_v53  ;;  %86 = vst [vmem:[#allocation2 + $0xf8] sm:$0xff] %v2430_v0  ;;  %v110_v0 = vld [vmem:[%s3427_s0 + $0xb8] sm:$0xff] }
  0x2f   :  { %399 = vmatmul.bf16.vlgmr.msra.gmra.mxu1 %v184_v53  ;;  %122 = vst.msk [vmem:[#allocation2 + $0x10] sm:$0xff] %vm119_vm0, %v89_v54  ;;  %953 = vmatpush.bf16.msrb.mxu0 %v2077_v22 }
  0x30   :  { %123 = vst.msk [vmem:[#allocation2 + $0x18] sm:$0xff] %vm119_vm0, %v90_v55  ;;  %1042 = vmatpush.bf16.msrb.mxu1 %v2141_v26  ;;  %775 = vmatpush.bf16.msrb.mxu2 %v2073_v46  ;;  %v106_v46 = vld [vmem:[%s3427_s0 + $0x98] sm:$0xff] }
  0x31   :  { %124 = vst.msk [vmem:[#allocation2 + $0x20] sm:$0xff] %vm119_vm0, %v91_v56  ;;  %864 = vmatpush.bf16.msrb.mxu3 %v2137_v50  ;;  %v2017_v50 = vor.u32 %v2288_v48, %v2016_v47 }
  0x32   :  { %125 = vst.msk [vmem:[#allocation2 + $0x28] sm:$0xff] %vm119_vm0, %v92_v57  ;;  %v2064_v57 = vld [vmem:[%s3429_s2 + $0x60] sm:$0xf] }
  0x33   :  { %126 = vst.msk [vmem:[#allocation2 + $0x30] sm:$0xff] %vm119_vm0, %v93_v58  ;;  %954 = vmatpush.bf16.msrb.mxu0 %v2069_v38  ;;  %v2300_v58 = vld [vmem:[%s3429_s2 + $0x64] sm:$0xf0] }
  0x34   :  { %127 = vst.msk [vmem:[#allocation2 + $0x38] sm:$0xff] %vm119_vm0, %v94_v59  ;;  %1043 = vmatpush.bf16.msrb.mxu1 %v2133_v42  ;;  %v2128_v59 = vld [vmem:[%s3429_s2 + $0xe0] sm:$0xf] }
  0x35   :  { %142 = vst.msk [vmem:[#allocation2 + $0xb0] sm:$0xff] %vm119_vm0, %v109_v63  ;;  %v2056_v63 = vld [vmem:[%s3429_s2 + $0x50] sm:$0xf] }
  0x36   :  { %v154_v60 = vld [vmem:[#allocation2 + $0x10] sm:$0xff]  ;;  %143 = vst.msk [vmem:[#allocation2 + $0xb8] sm:$0xff] %vm119_vm0, %v110_v0  ;;  %v2298_v0 = vld [vmem:[%s3429_s2 + $0x54] sm:$0xf0] }
  0x37   :  { %v155_v61 = vld [vmem:[#allocation2 + $0x18] sm:$0xff]  ;;  %128 = vst.msk [vmem:[#allocation2 + $0x40] sm:$0xff] %vm119_vm0, %v95_v1  ;;  %v2120_v1 = vld [vmem:[%s3429_s2 + $0xd0] sm:$0xf] }
  0x38   :  { %v185_v62 = vpack.c.bf16 %v155_v61, %v154_v60  ;;  %129 = vst.msk [vmem:[#allocation2 + $0x48] sm:$0xff] %vm119_vm0, %v96_v2  ;;  %v156_v3 = vld [vmem:[#allocation2 + $0x20] sm:$0xff]  ;;  %v2065_v60 = vor.u32 %v2300_v58, %v2064_v57  ;;  %v2316_v61 = vld [vmem:[%s3429_s2 + $0xe4] sm:$0xf0]  ;;  %v2057_v2 = vor.u32 %v2298_v0, %v2056_v63  ;;  %v2050_v57 = vld [vmem:[%s3429_s2 + $0x48] sm:$0xf0] }
  0x39   :  { %v157_v4 = vld [vmem:[#allocation2 + $0x28] sm:$0xff]  ;;  %144 = vst.msk [vmem:[#allocation2 + $0xc0] sm:$0xff] %vm119_vm0, %v111_v9  ;;  %v2311_v63 = vld [vmem:[%s3429_s2 + $0xc4] sm:$0xf] }
  0x3a   :  { %v186_v8 = vpack.c.bf16 %v157_v4, %v156_v3  ;;  %145 = vst.msk [vmem:[#allocation2 + $0xc8] sm:$0xff] %vm119_vm0, %v112_v10  ;;  %v158_v13 = vld [vmem:[#allocation2 + $0x30] sm:$0xff]  ;;  %776 = vmatpush.bf16.msrb.mxu2 %v2065_v60  ;;  %v2314_v3 = vld [vmem:[%s3429_s2 + $0xd4] sm:$0xf0]  ;;  %v2312_v9 = vld [vmem:[%s3429_s2 + $0xc4] sm:$0xf0] }
  0x3b   :  { %130 = vst.msk [vmem:[#allocation2 + $0x50] sm:$0xff] %vm119_vm0, %v97_v11  ;;  %v159_v14 = vld [vmem:[#allocation2 + $0x38] sm:$0xff]  ;;  %v2121_v4 = vor.u32 %v2314_v3, %v2120_v1  ;;  %v108_v60 = vld [vmem:[%s3427_s0 + $0xa8] sm:$0xff] }
  0x3c   :  { %v174_v5 = vld [vmem:[#allocation2 + $0xb0] sm:$0xff]  ;;  %131 = vst.msk [vmem:[#allocation2 + $0x58] sm:$0xff] %vm119_vm0, %v98_v12  ;;  %v187_v18 = vpack.c.bf16 %v159_v14, %v158_v13  ;;  %v118_v10 = vld [vmem:[%s3427_s0 + $0xf8] sm:$0xff]  ;;  %v103_v12 = vld [vmem:[%s3427_s0 + $0x80] sm:$0xff] }
  0x3d   :  { %v175_v6 = vld [vmem:[#allocation2 + $0xb8] sm:$0xff]  ;;  %146 = vst.msk [vmem:[#allocation2 + $0xd0] sm:$0xff] %vm119_vm0, %v113_v24  ;;  %v104_v13 = vld [vmem:[%s3427_s0 + $0x88] sm:$0xff] }
  0x3e   :  { %315 = vmatmul.bf16.gmra.mxu0 %v185_v62  ;;  %v195_v7 = vpack.c.bf16 %v175_v6, %v174_v5  ;;  %147 = vst.msk [vmem:[#allocation2 + $0xd8] sm:$0xff] %vm119_vm0, %v114_v25  ;;  %v160_v29 = vld [vmem:[#allocation2 + $0x40] sm:$0xff]  ;;  %v2296_v6 = vld [vmem:[%s3429_s2 + $0x44] sm:$0xf0]  ;;  %777 = vmatpush.bf16.msrb.mxu2 %v2057_v2  ;;  %v2310_v24 = vld [vmem:[%s3429_s2 + $0xb4] sm:$0xf0] }
  0x3f   :  { %404 = vmatmul.bf16.gmra.mxu1 %v185_v62  ;;  %132 = vst.msk [vmem:[#allocation2 + $0x60] sm:$0xff] %vm119_vm0, %v99_v27  ;;  %v161_v30 = vld [vmem:[#allocation2 + $0x48] sm:$0xff]  ;;  %v2129_v62 = vor.u32 %v2316_v61, %v2128_v59  ;;  %v2048_v5 = vld [vmem:[%s3429_s2 + $0x40] sm:$0xf]  ;;  %v2105_v26 = vor.u32 %v2310_v24, %v2104_v23 }
  0x40   :  { %365 = vmatmul.bf16.vlgmr.msra.gmra.mxu2 %v195_v7  ;;  %454 = vmatmul.bf16.vlgmr.msra.gmra.mxu3 %v195_v7  ;;  %v176_v15 = vld [vmem:[#allocation2 + $0xc0] sm:$0xff]  ;;  %133 = vst.msk [vmem:[#allocation2 + $0x68] sm:$0xff] %vm119_vm0, %v100_v28  ;;  %v188_v33 = vpack.c.bf16 %v161_v30, %v160_v29  ;;  %v117_v7 = vld [vmem:[%s3427_s0 + $0xf0] sm:$0xff]  ;;  %v2049_v11 = vor.u32 %v2296_v6, %v2048_v5  ;;  %v2292_v28 = vld [vmem:[%s3429_s2 + $0x24] sm:$0xf0] }
  0x41   :  { %v177_v16 = vld [vmem:[#allocation2 + $0xc8] sm:$0xff]  ;;  %148 = vst.msk [vmem:[#allocation2 + $0xe0] sm:$0xff] %vm119_vm0, %v115_v40  ;;  %865 = vmatpush.bf16.msrb.mxu3 %v2129_v62  ;;  %v2032_v27 = vld [vmem:[%s3429_s2 + $0x20] sm:$0xf]  ;;  %v2290_v40 = vld [vmem:[%s3429_s2 + $0x14] sm:$0xf0] }
  0x42   :  { %v196_v17 = vpack.c.bf16 %v177_v16, %v176_v15  ;;  %149 = vst.msk [vmem:[#allocation2 + $0xe8] sm:$0xff] %vm119_vm0, %v116_v41  ;;  %v162_v51 = vld [vmem:[#allocation2 + $0x50] sm:$0xff]  ;;  %778 = vmatpush.bf16.msrb.mxu2 %v2049_v11  ;;  %v2033_v29 = vor.u32 %v2292_v28, %v2032_v27  ;;  %v2096_v30 = vld [vmem:[%s3429_s2 + $0xa0] sm:$0xf]  ;;  %v2025_v42 = vor.u32 %v2290_v40, %v2024_v39  ;;  %v2114_v0 = vld [vmem:[%s3429_s2 + $0xc8] sm:$0xf0] }
  0x43   :  { %134 = vst.msk [vmem:[#allocation2 + $0x70] sm:$0xff] %vm119_vm0, %v101_v45  ;;  %v163_v52 = vld [vmem:[#allocation2 + $0x58] sm:$0xff]  ;;  %v2088_v41 = vld [vmem:[%s3429_s2 + $0x90] sm:$0xf]  ;;  %v107_v59 = vld [vmem:[%s3427_s0 + $0xa0] sm:$0xff]  ;;  %v2117_v1 = vor.u32 %v2311_v63, %v2114_v0 }
  0x44   :  { %v178_v31 = vld [vmem:[#allocation2 + $0xd0] sm:$0xff]  ;;  %135 = vst.msk [vmem:[#allocation2 + $0x78] sm:$0xff] %vm119_vm0, %v102_v49  ;;  %v189_v55 = vpack.c.bf16 %v163_v52, %v162_v51  ;;  %v2089_v44 = vor.u32 %v2306_v43, %v2088_v41  ;;  %v2080_v49 = vld [vmem:[%s3429_s2 + $0x80] sm:$0xf]  ;;  %v2304_v51 = vld [vmem:[%s3429_s2 + $0x84] sm:$0xf0] }
  0x45   :  { %v179_v32 = vld [vmem:[#allocation2 + $0xd8] sm:$0xff]  ;;  %150 = vst.msk [vmem:[#allocation2 + $0xf0] sm:$0xff] %vm119_vm0, %v117_v7  ;;  %866 = vmatpush.bf16.msrb.mxu3 %v2121_v4  ;;  %v105_v45 = vld [vmem:[%s3427_s0 + $0x90] sm:$0xff]  ;;  %v216_v3 = vld [vmem:[%s3432_s5] ss:$8 sm:$0x3] }
  0x46   :  { %v197_v34 = vpack.c.bf16 %v179_v32, %v178_v31  ;;  %151 = vst.msk [vmem:[#allocation2 + $0xf8] sm:$0xff] %vm119_vm0, %v118_v10  ;;  %v164_v15 = vld [vmem:[#allocation2 + $0x60] sm:$0xff]  ;;  %v2308_v31 = vld [vmem:[%s3429_s2 + $0xa4] sm:$0xf0]  ;;  %v2297_v32 = vld [vmem:[%s3429_s2 + $0x54] sm:$0xf] }
  0x47   :  { %136 = vst.msk [vmem:[#allocation2 + $0x80] sm:$0xff] %vm119_vm0, %v103_v12  ;;  %v165_v16 = vld [vmem:[#allocation2 + $0x68] sm:$0xff]  ;;  %v2097_v35 = vor.u32 %v2308_v31, %v2096_v30  ;;  %v2293_v6 = vld [vmem:[%s3429_s2 + $0x34] sm:$0xf]  ;;  %v2042_v7 = vld [vmem:[%s3429_s2 + $0x38] sm:$0xf0] }
  0x48   :  { %v180_v53 = vld [vmem:[#allocation2 + $0xe0] sm:$0xff]  ;;  %137 = vst.msk [vmem:[#allocation2 + $0x88] sm:$0xff] %vm119_vm0, %v104_v13  ;;  %v190_v20 = vpack.c.bf16 %v165_v16, %v164_v15  ;;  %v2309_v10 = vld [vmem:[%s3429_s2 + $0xb4] sm:$0xf]  ;;  %v2106_v11 = vld [vmem:[%s3429_s2 + $0xb8] sm:$0xf0] }
  0x49   :  { %v181_v54 = vld [vmem:[#allocation2 + $0xe8] sm:$0xff]  ;;  %138 = vst.msk [vmem:[#allocation2 + $0x90] sm:$0xff] %vm119_vm0, %v105_v45  ;;  %v2793_v12 = vperm.slane %v216_v3, 1  ;;  %v2109_v13 = vor.u32 %v2309_v10, %v2106_v11  ;;  %v2307_v16 = vld [vmem:[%s3429_s2 + $0xa4] sm:$0xf] }
  0x4a   :  { %v198_v56 = vpack.c.bf16 %v181_v54, %v180_v53  ;;  %v166_v52 = vld [vmem:[#allocation2 + $0x70] sm:$0xff]  ;;  %v2081_v54 = vor.u32 %v2304_v51, %v2080_v49  ;;  %139 = vst.msk [vmem:[#allocation2 + $0x98] sm:$0xff] %vm119_vm0, %v106_v46  ;;  %v2034_v15 = vld [vmem:[%s3429_s2 + $0x28] sm:$0xf0]  ;;  %v2026_v27 = vld [vmem:[%s3429_s2 + $0x18] sm:$0xf0] }
  0x4b   :  { %v167_v53 = vld [vmem:[#allocation2 + $0x78] sm:$0xff]  ;;  %140 = vst.msk [vmem:[#allocation2 + $0xa0] sm:$0xff] %vm119_vm0, %v107_v59  ;;  %v2305_v28 = vld [vmem:[%s3429_s2 + $0x94] sm:$0xf]  ;;  %v2287_v40 = vld [vmem:[%s3429_s2 + $0x4] sm:$0xf] }
  0x4c   :  { %141 = vst.msk [vmem:[#allocation2 + $0xa8] sm:$0xff] %vm119_vm0, %v108_v60  ;;  %v2018_v41 = vld [vmem:[%s3429_s2 + $0x8] sm:$0xf0] }
  0x4d   :  { %v183_v21 = vld [vmem:[#allocation2 + $0xf8] sm:$0xff]  ;;  %v2082_v45 = vld [vmem:[%s3429_s2 + $0x88] sm:$0xf0] }
  0x4e   :  { %320 = vmatmul.bf16.gmra.mxu0 %v186_v8  ;;  %v168_v61 = vld [vmem:[#allocation2 + $0x80] sm:$0xff] }
  0x4f   :  { %409 = vmatmul.bf16.gmra.mxu1 %v186_v8  ;;  %v2112_v8 = vld [vmem:[%s3429_s2 + $0xc0] sm:$0xf]  ;;  %v169_v62 = vld [vmem:[#allocation2 + $0x88] sm:$0xff] }
  0x50   :  { %370 = vmatmul.bf16.gmra.mxu2 %v196_v17  ;;  %459 = vmatmul.bf16.gmra.mxu3 %v196_v17  ;;  %v2113_v14 = vor.u32 %v2312_v9, %v2112_v8  ;;  %v182_v17 = vld [vmem:[#allocation2 + $0xf0] sm:$0xff]  ;;  %v192_v2 = vpack.c.bf16 %v169_v62, %v168_v61  ;;  %v2785_v8 = vperm.slane %v216_v3, 0  ;;  %v2045_v9 = vor.u32 %v2293_v6, %v2042_v7 }
  0x51   :  { %v199_v25 = vpack.c.bf16 %v183_v21, %v182_v17 }
  0x52   :  { %867 = vmatpush.bf16.msrb.mxu3 %v2113_v14  ;;  %v2291_v14 = vld [vmem:[%s3429_s2 + $0x24] sm:$0xf] }
  0x53   :  { %v172_v59 = vld [vmem:[#allocation2 + $0xa0] sm:$0xff]  ;;  %v173_v60 = vld [vmem:[#allocation2 + $0xa8] sm:$0xff] }
  0x54   :  { %v194_v63 = vpack.c.bf16 %v173_v60, %v172_v59 }
  0x56   :  { %868 = vmatpush.bf16.msrb.mxu3 %v2105_v26  ;;  %v2289_v26 = vld [vmem:[%s3429_s2 + $0x14] sm:$0xf] }
  0x57   :  { %v2029_v31 = vor.u32 %v2289_v26, %v2026_v27 }
  0x5a   :  { %869 = vmatpush.bf16.msrb.mxu3 %v2097_v35  ;;  %v170_v35 = vld [vmem:[#allocation2 + $0x90] sm:$0xff] }
  0x5e   :  { %325 = vmatmul.bf16.gmra.mxu0 %v187_v18  ;;  %870 = vmatpush.bf16.msrb.mxu3 %v2089_v44  ;;  %v2021_v44 = vor.u32 %v2287_v40, %v2018_v41 }
  0x5f   :  { %414 = vmatmul.bf16.gmra.mxu1 %v187_v18  ;;  %v2040_v18 = vld [vmem:[%s3429_s2 + $0x30] sm:$0xf] }
  0x60   :  { %375 = vmatmul.bf16.gmra.mxu2 %v197_v34  ;;  %464 = vmatmul.bf16.gmra.mxu3 %v197_v34  ;;  %v2041_v22 = vor.u32 %v2294_v19, %v2040_v18  ;;  %v2313_v34 = vld [vmem:[%s3429_s2 + $0xd4] sm:$0xf]  ;;  %v2037_v18 = vor.u32 %v2291_v14, %v2034_v15  ;;  %v2098_v19 = vld [vmem:[%s3429_s2 + $0xa8] sm:$0xf0] }
  0x61   :  { %v2125_v38 = vor.u32 %v2313_v34, %v2122_v37 }
  0x62   :  { %779 = vmatpush.bf16.msrb.mxu2 %v2041_v22  ;;  %871 = vmatpush.bf16.msrb.mxu3 %v2081_v54  ;;  %v2101_v22 = vor.u32 %v2307_v16, %v2098_v19 }
  0x63   :  { %1044 = vmatpush.bf16.msrb.mxu1 %v2125_v38 }
  0x66   :  { %780 = vmatpush.bf16.msrb.mxu2 %v2033_v29 }
  0x67   :  { %1045 = vmatpush.bf16.msrb.mxu1 %v2117_v1 }
  0x6a   :  { %781 = vmatpush.bf16.msrb.mxu2 %v2025_v42  ;;  %v2303_v42 = vld [vmem:[%s3429_s2 + $0x84] sm:$0xf] }
  0x6b   :  { %1046 = vmatpush.bf16.msrb.mxu1 %v2109_v13  ;;  %v2085_v47 = vor.u32 %v2303_v42, %v2082_v45 }
  0x6e   :  { %330 = vmatmul.bf16.gmra.mxu0 %v188_v33  ;;  %782 = vmatpush.bf16.msrb.mxu2 %v2017_v50 }
  0x6f   :  { %419 = vmatmul.bf16.gmra.mxu1 %v188_v33  ;;  %v2058_v33 = vld [vmem:[%s3429_s2 + $0x58] sm:$0xf0] }
  0x70   :  { %380 = vmatmul.bf16.gmra.mxu2 %v198_v56  ;;  %469 = vmatmul.bf16.gmra.mxu3 %v198_v56  ;;  %v2061_v36 = vor.u32 %v2297_v32, %v2058_v33  ;;  %v2295_v56 = vld [vmem:[%s3429_s2 + $0x44] sm:$0xf]  ;;  %v2090_v32 = vld [vmem:[%s3429_s2 + $0x98] sm:$0xf0] }
  0x71   :  { %v2053_v58 = vor.u32 %v2295_v56, %v2050_v57  ;;  %1047 = vmatpush.bf16.msrb.mxu1 %v2101_v22  ;;  %v2093_v37 = vor.u32 %v2305_v28, %v2090_v32 }
  0x72   :  { %955 = vmatpush.bf16.msrb.mxu0 %v2061_v36  ;;  %v171_v36 = vld [vmem:[#allocation2 + $0x98] sm:$0xff] }
  0x73   :  { %v193_v43 = vpack.c.bf16 %v171_v36, %v170_v35 }
  0x75   :  { %1048 = vmatpush.bf16.msrb.mxu1 %v2093_v37 }
  0x76   :  { %956 = vmatpush.bf16.msrb.mxu0 %v2053_v58 }
  0x79   :  { %1049 = vmatpush.bf16.msrb.mxu1 %v2085_v47 }
  0x7a   :  { %957 = vmatpush.bf16.msrb.mxu0 %v2045_v9 }
  0x7e   :  { %335 = vmatmul.bf16.gmra.mxu0 %v189_v55 }
  0x7f   :  { %424 = vmatmul.bf16.gmra.mxu1 %v189_v55  ;;  %v191_v55 = vpack.c.bf16 %v167_v53, %v166_v52  ;;  %958 = vmatpush.bf16.msrb.mxu0 %v2037_v18 }
  0x80   :  { %385 = vmatmul.bf16.gmra.mxu2 %v199_v25  ;;  %474 = vmatmul.bf16.gmra.mxu3 %v199_v25 }
  0x83   :  { %959 = vmatpush.bf16.msrb.mxu0 %v2029_v31 }
  0x87   :  { %960 = vmatpush.bf16.msrb.mxu0 %v2021_v44 }
  0x8e   :  { %340 = vmatmul.bf16.gmra.mxu0 %v190_v20 }
  0x8f   :  { %429 = vmatmul.bf16.gmra.mxu1 %v190_v20 }
  0x9e   :  { %345 = vmatmul.bf16.gmra.mxu0 %v191_v55 }
  0x9f   :  { %434 = vmatmul.bf16.gmra.mxu1 %v191_v55 }
  0xab   :  { %v311_v4 = vpop.f32.mrf.mxu0 }
  0xac   :  { %v400_v5 = vpop.f32.mrf.mxu1  ;;  %v312_v17 = vadd.f32 %v311_v4, %v2785_v8 }
  0xad   :  { %v401_v20 = vadd.f32 %v400_v5, %v2793_v12 }
  0xae   :  { %350 = vmatmul.bf16.gmra.mxu0 %v192_v2  ;;  %v480_v29 = vmax.f32 %v312_v17, 0.0 }
  0xaf   :  { %439 = vmatmul.bf16.gmra.mxu1 %v192_v2  ;;  %v481_v33 = vmax.f32 %v401_v20, 0.0 }
  0xb3   :  { %v313_v21 = vpop.f32.mrf.mxu0 }
  0xb4   :  { %v314_v23 = vadd.f32 %v313_v21, %v2785_v8  ;;  %v402_v24 = vpop.f32.mrf.mxu1 }
  0xb5   :  { %v403_v25 = vadd.f32 %v402_v24, %v2793_v12 }
  0xb6   :  { %v482_v30 = vmax.f32 %v314_v23, 0.0 }
  0xb7   :  { %v483_v34 = vmax.f32 %v403_v25, 0.0 }
  0xb8   :  { %v544_v38 = vpack.c.bf16 %v482_v30, %v480_v29 }
  0xb9   :  { %v545_v39 = vpack.c.bf16 %v483_v34, %v481_v33 }
  0xba   :  { %783 = vmatmul.bf16.vlgmr.msrb.gmra.mxu2 %v544_v38 }
  0xbb   :  { %872 = vmatmul.bf16.vlgmr.msrb.gmra.mxu3 %v545_v39  ;;  %v316_v46 = vpop.f32.mrf.mxu0 }
  0xbc   :  { %v405_v48 = vpop.f32.mrf.mxu1  ;;  %v317_v49 = vadd.f32 %v316_v46, %v2785_v8 }
  0xbd   :  { %v406_v50 = vadd.f32 %v405_v48, %v2793_v12 }
  0xbe   :  { %355 = vmatmul.bf16.gmra.mxu0 %v193_v43  ;;  %v484_v55 = vmax.f32 %v317_v49, 0.0 }
  0xbf   :  { %444 = vmatmul.bf16.gmra.mxu1 %v193_v43  ;;  %v485_v57 = vmax.f32 %v406_v50, 0.0 }
  0xc3   :  { %v318_v51 = vpop.f32.mrf.mxu0  ;;  %v2843_v16 = vpop.f32.mrf.mxu2 }
  0xc4   :  { %v319_v52 = vadd.f32 %v318_v51, %v2785_v8  ;;  %v407_v53 = vpop.f32.mrf.mxu1  ;;  %v2845_v17 = vpop.f32.mrf.mxu3 }
  0xc5   :  { %v408_v54 = vadd.f32 %v407_v53, %v2793_v12 }
  0xc6   :  { %v486_v56 = vmax.f32 %v319_v52, 0.0 }
  0xc7   :  { %v487_v58 = vmax.f32 %v408_v54, 0.0 }
  0xc8   :  { %v546_v61 = vpack.c.bf16 %v486_v56, %v484_v55 }
  0xc9   :  { %v547_v62 = vpack.c.bf16 %v487_v58, %v485_v57 }
  0xca   :  { %788 = vmatmul.bf16.gmra.mxu2 %v546_v61 }
  0xcb   :  { %877 = vmatmul.bf16.gmra.mxu3 %v547_v62  ;;  %v321_v0 = vpop.f32.mrf.mxu0  ;;  %v2849_v23 = vpop.f32.mrf.mxu2 }
  0xcc   :  { %v410_v1 = vpop.f32.mrf.mxu1  ;;  %v322_v2 = vadd.f32 %v321_v0, %v2785_v8  ;;  %v2852_v26 = vpop.f32.mrf.mxu3 }
  0xcd   :  { %v411_v3 = vadd.f32 %v410_v1, %v2793_v12 }
  0xce   :  { %360 = vmatmul.bf16.gmra.mxu0 %v194_v63  ;;  %v488_v9 = vmax.f32 %v322_v2, 0.0  ;;  %v2201_v2 = vld [vmem:[#allocation5 + $0x70] sm:$0xf] }
  0xcf   :  { %449 = vmatmul.bf16.gmra.mxu1 %v194_v63  ;;  %v489_v11 = vmax.f32 %v411_v3, 0.0  ;;  %v2334_v3 = vld [vmem:[#allocation5 + $0x74] sm:$0xf0] }
  0xd3   :  { %v323_v4 = vpop.f32.mrf.mxu0  ;;  %v2855_v36 = vpop.f32.mrf.mxu2 }
  0xd4   :  { %v324_v5 = vadd.f32 %v323_v4, %v2785_v8  ;;  %v412_v6 = vpop.f32.mrf.mxu1  ;;  %v2857_v37 = vpop.f32.mrf.mxu3 }
  0xd5   :  { %v413_v7 = vadd.f32 %v412_v6, %v2793_v12 }
  0xd6   :  { %v490_v10 = vmax.f32 %v324_v5, 0.0  ;;  %v2202_v5 = vor.u32 %v2334_v3, %v2201_v2  ;;  %v2193_v2 = vld [vmem:[#allocation5 + $0x60] sm:$0xf]  ;;  %v2332_v3 = vld [vmem:[#allocation5 + $0x64] sm:$0xf0] }
  0xd7   :  { %v491_v13 = vmax.f32 %v413_v7, 0.0 }
  0xd8   :  { %v548_v14 = vpack.c.bf16 %v490_v10, %v488_v9  ;;  %1426 = vmatpush.bf16.msra.mxu2 %v2202_v5  ;;  %v2194_v5 = vor.u32 %v2332_v3, %v2193_v2 }
  0xd9   :  { %v549_v15 = vpack.c.bf16 %v491_v13, %v489_v11  ;;  %v2265_v13 = vld [vmem:[#allocation5 + $0xf0] sm:$0xf] }
  0xda   :  { %793 = vmatmul.bf16.gmra.mxu2 %v548_v14 }
  0xdb   :  { %882 = vmatmul.bf16.gmra.mxu3 %v549_v15  ;;  %v326_v18 = vpop.f32.mrf.mxu0  ;;  %v2863_v48 = vpop.f32.mrf.mxu2 }
  0xdc   :  { %v415_v19 = vpop.f32.mrf.mxu1  ;;  %v327_v20 = vadd.f32 %v326_v18, %v2785_v8  ;;  %v2867_v50 = vpop.f32.mrf.mxu3  ;;  %v2333_v18 = vld [vmem:[#allocation5 + $0x74] sm:$0xf]  ;;  %1427 = vmatpush.bf16.msra.mxu2 %v2194_v5 }
  0xdd   :  { %v416_v21 = vadd.f32 %v415_v19, %v2793_v12  ;;  %v2203_v19 = vld [vmem:[#allocation5 + $0x78] sm:$0xf0] }
  0xde   :  { %961 = vmatmul.bf16.vlgmr.msrb.gmra.mxu0 %v544_v38  ;;  %v492_v28 = vmax.f32 %v327_v20, 0.0  ;;  %v2349_v20 = vld [vmem:[#allocation5 + $0xf4] sm:$0xf] }
  0xdf   :  { %1050 = vmatmul.bf16.vlgmr.msrb.gmra.mxu1 %v545_v39  ;;  %v493_v30 = vmax.f32 %v416_v21, 0.0  ;;  %v2206_v21 = vor.u32 %v2333_v18, %v2203_v19  ;;  %v2195_v18 = vld [vmem:[#allocation5 + $0x68] sm:$0xf0]  ;;  %v2347_v19 = vld [vmem:[#allocation5 + $0xe4] sm:$0xf] }
  0xe1   :  { %1604 = vmatpush.bf16.msra.mxu0 %v2206_v21 }
  0xe3   :  { %v328_v22 = vpop.f32.mrf.mxu0  ;;  %v2873_v54 = vpop.f32.mrf.mxu2 }
  0xe4   :  { %v329_v24 = vadd.f32 %v328_v22, %v2785_v8  ;;  %v417_v25 = vpop.f32.mrf.mxu1  ;;  %v2876_v56 = vpop.f32.mrf.mxu3  ;;  %v2267_v22 = vld [vmem:[#allocation5 + $0xf8] sm:$0xf0] }
  0xe5   :  { %v418_v27 = vadd.f32 %v417_v25, %v2793_v12  ;;  %v2270_v25 = vor.u32 %v2349_v20, %v2267_v22 }
  0xe6   :  { %v494_v29 = vmax.f32 %v329_v24, 0.0 }
  0xe7   :  { %v495_v31 = vmax.f32 %v418_v27, 0.0  ;;  %1693 = vmatpush.bf16.msra.mxu1 %v2270_v25  ;;  %v2259_v25 = vld [vmem:[#allocation5 + $0xe8] sm:$0xf0] }
  0xe8   :  { %v550_v32 = vpack.c.bf16 %v494_v29, %v492_v28 }
  0xe9   :  { %v551_v33 = vpack.c.bf16 %v495_v31, %v493_v30 }
  0xea   :  { %798 = vmatmul.bf16.gmra.mxu2 %v550_v32 }
  0xeb   :  { %887 = vmatmul.bf16.gmra.mxu3 %v551_v33  ;;  %v331_v34 = vpop.f32.mrf.mxu0  ;;  %v2887_v9 = vpop.f32.mrf.mxu2 }
  0xec   :  { %v420_v35 = vpop.f32.mrf.mxu1  ;;  %v332_v38 = vadd.f32 %v331_v34, %v2785_v8  ;;  %v2889_v11 = vpop.f32.mrf.mxu3 }
  0xed   :  { %v421_v39 = vadd.f32 %v420_v35, %v2793_v12 }
  0xee   :  { %966 = vmatmul.bf16.gmra.mxu0 %v546_v61  ;;  %v496_v44 = vmax.f32 %v332_v38, 0.0 }
  0xef   :  { %1055 = vmatmul.bf16.gmra.mxu1 %v547_v62  ;;  %v497_v46 = vmax.f32 %v421_v39, 0.0 }
  0xf3   :  { %v333_v40 = vpop.f32.mrf.mxu0 }
  0xf4   :  { %v334_v41 = vadd.f32 %v333_v40, %v2785_v8  ;;  %v422_v42 = vpop.f32.mrf.mxu1  ;;  %v2897_v35 = vpop.f32.mrf.mxu3 }
  0xf5   :  { %v423_v43 = vadd.f32 %v422_v42, %v2793_v12 }
  0xf6   :  { %v498_v45 = vmax.f32 %v334_v41, 0.0 }
  0xf7   :  { %v499_v47 = vmax.f32 %v423_v43, 0.0 }
  0xf8   :  { %v2865_v49 = vpack.c.bf16 %v498_v45, %v496_v44 }
  0xf9   :  { %v2869_v51 = vpack.c.bf16 %v499_v47, %v497_v46 }
  0xfa   :  { %803 = vmatmul.bf16.gmra.mxu2 %v2865_v49 }
  0xfb   :  { %892 = vmatmul.bf16.gmra.mxu3 %v2869_v51  ;;  %v336_v52 = vpop.f32.mrf.mxu0 }
  0xfc   :  { %v425_v53 = vpop.f32.mrf.mxu1  ;;  %v337_v55 = vadd.f32 %v336_v52, %v2785_v8  ;;  %v2909_v45 = vpop.f32.mrf.mxu3 }
  0xfd   :  { %v426_v57 = vadd.f32 %v425_v53, %v2793_v12 }
  0xfe   :  { %971 = vmatmul.bf16.gmra.mxu0 %v548_v14  ;;  %v500_v62 = vmax.f32 %v337_v55, 0.0  ;;  %v2350_v14 = vld [vmem:[#allocation5 + $0xf4] sm:$0xf0] }
  0xff   :  { %1060 = vmatmul.bf16.gmra.mxu1 %v549_v15  ;;  %v501_v0 = vmax.f32 %v426_v57, 0.0  ;;  %v2266_v15 = vor.u32 %v2350_v14, %v2265_v13 }
 0x101   :  { %1515 = vmatpush.bf16.msra.mxu3 %v2266_v15  ;;  %v2331_v15 = vld [vmem:[#allocation5 + $0x64] sm:$0xf] }
 0x103   :  { %v338_v58 = vpop.f32.mrf.mxu0 }
 0x104   :  { %v339_v59 = vadd.f32 %v338_v58, %v2785_v8  ;;  %v427_v60 = vpop.f32.mrf.mxu1 }
 0x105   :  { %v428_v61 = vadd.f32 %v427_v60, %v2793_v12 }
 0x106   :  { %v502_v63 = vmax.f32 %v339_v59, 0.0 }
 0x107   :  { %v503_v1 = vmax.f32 %v428_v61, 0.0 }
 0x108   :  { %v2881_v4 = vpack.c.bf16 %v502_v63, %v500_v62  ;;  %v2922_v63 = vpop.f32.mrf.mxu3 }
 0x109   :  { %v2883_v6 = vpack.c.bf16 %v503_v1, %v501_v0 }
 0x10a   :  { %808 = vmatmul.bf16.gmra.mxu2 %v2881_v4 }
 0x10b   :  { %897 = vmatmul.bf16.gmra.mxu3 %v2883_v6  ;;  %v341_v7 = vpop.f32.mrf.mxu0 }
 0x10c   :  { %v430_v10 = vpop.f32.mrf.mxu1  ;;  %v342_v24 = vadd.f32 %v341_v7, %v2785_v8  ;;  %v2257_v7 = vld [vmem:[#allocation5 + $0xe0] sm:$0xf] }
 0x10d   :  { %v431_v27 = vadd.f32 %v430_v10, %v2793_v12  ;;  %v2348_v10 = vld [vmem:[#allocation5 + $0xe4] sm:$0xf0] }
 0x10e   :  { %976 = vmatmul.bf16.gmra.mxu0 %v550_v32  ;;  %v2895_v32 = vpop.f32.mrf.mxu2  ;;  %v2258_v13 = vor.u32 %v2348_v10, %v2257_v7 }
 0x10f   :  { %1065 = vmatmul.bf16.gmra.mxu1 %v551_v33  ;;  %v504_v33 = vmax.f32 %v342_v24, 0.0  ;;  %v505_v38 = vmax.f32 %v431_v27, 0.0  ;;  %v2198_v24 = vor.u32 %v2331_v15, %v2195_v18 }
 0x110   :  { %1516 = vmatpush.bf16.msra.mxu3 %v2258_v13  ;;  %v2932_v27 = vpop.f32.mrf.mxu3 }
 0x111   :  { %1605 = vmatpush.bf16.msra.mxu0 %v2198_v24 }
 0x113   :  { %v343_v28 = vpop.f32.mrf.mxu0 }
 0x114   :  { %v344_v29 = vadd.f32 %v343_v28, %v2785_v8  ;;  %v432_v30 = vpop.f32.mrf.mxu1  ;;  %v2262_v28 = vor.u32 %v2347_v19, %v2259_v25 }
 0x115   :  { %v433_v31 = vadd.f32 %v432_v30, %v2793_v12 }
 0x116   :  { %v506_v34 = vmax.f32 %v344_v29, 0.0  ;;  %v2907_v44 = vpop.f32.mrf.mxu2  ;;  %1694 = vmatpush.bf16.msra.mxu1 %v2262_v28 }
 0x117   :  { %v507_v39 = vmax.f32 %v433_v31, 0.0 }
 0x118   :  { %v2899_v40 = vpack.c.bf16 %v506_v34, %v504_v33 }
 0x119   :  { %v2901_v41 = vpack.c.bf16 %v507_v39, %v505_v38  ;;  %v2938_v38 = vld [vmem:[%s3432_s5 + $0x1] ss:$8 sm:$0x3] }
 0x11a   :  { %813 = vmatmul.bf16.gmra.mxu2 %v2899_v40 }
 0x11b   :  { %902 = vmatmul.bf16.gmra.mxu3 %v2901_v41  ;;  %v346_v42 = vpop.f32.mrf.mxu0 }
 0x11c   :  { %v435_v43 = vpop.f32.mrf.mxu1  ;;  %v347_v46 = vadd.f32 %v346_v42, %v2785_v8 }
 0x11d   :  { %v436_v47 = vadd.f32 %v435_v43, %v2793_v12  ;;  %v2946_v43 = vperm.slane %v2938_v38, 0 }
 0x11e   :  { %981 = vmatmul.bf16.gmra.mxu0 %v2865_v49  ;;  %v508_v58 = vmax.f32 %v347_v46, 0.0  ;;  %v2919_v62 = vpop.f32.mrf.mxu2 }
 0x11f   :  { %1070 = vmatmul.bf16.gmra.mxu1 %v2869_v51  ;;  %v509_v60 = vmax.f32 %v436_v47, 0.0 }
 0x123   :  { %v348_v52 = vpop.f32.mrf.mxu0 }
 0x124   :  { %v349_v53 = vadd.f32 %v348_v52, %v2785_v8  ;;  %v437_v55 = vpop.f32.mrf.mxu1 }
 0x125   :  { %v438_v57 = vadd.f32 %v437_v55, %v2793_v12 }
 0x126   :  { %v510_v59 = vmax.f32 %v349_v53, 0.0  ;;  %v2929_v22 = vpop.f32.mrf.mxu2 }
 0x127   :  { %v511_v49 = vmax.f32 %v438_v57, 0.0 }
 0x128   :  { %v2915_v61 = vpack.c.bf16 %v510_v59, %v508_v58 }
 0x129   :  { %v2917_v51 = vpack.c.bf16 %v511_v49, %v509_v60 }
 0x12a   :  { %818 = vmatmul.bf16.gmra.mxu2 %v2915_v61 }
 0x12b   :  { %907 = vmatmul.bf16.gmra.mxu3 %v2917_v51  ;;  %v351_v0 = vpop.f32.mrf.mxu0 }
 0x12c   :  { %v440_v1 = vpop.f32.mrf.mxu1  ;;  %v352_v14 = vadd.f32 %v351_v0, %v2785_v8 }
 0x12d   :  { %v441_v20 = vadd.f32 %v440_v1, %v2793_v12 }
 0x12e   :  { %986 = vmatmul.bf16.gmra.mxu0 %v2881_v4  ;;  %v512_v30 = vmax.f32 %v352_v14, 0.0 }
 0x12f   :  { %1075 = vmatmul.bf16.gmra.mxu1 %v2883_v6  ;;  %v513_v33 = vmax.f32 %v441_v20, 0.0  ;;  %v2185_v20 = vld [vmem:[#allocation5 + $0x50] sm:$0xf] }
 0x133   :  { %v353_v21 = vpop.f32.mrf.mxu0 }
 0x134   :  { %v354_v4 = vadd.f32 %v353_v21, %v2785_v8  ;;  %v442_v6 = vpop.f32.mrf.mxu1  ;;  %v2330_v21 = vld [vmem:[#allocation5 + $0x54] sm:$0xf0] }
 0x135   :  { %v443_v29 = vadd.f32 %v442_v6, %v2793_v12  ;;  %v2186_v25 = vor.u32 %v2330_v21, %v2185_v20 }
 0x136   :  { %v514_v31 = vmax.f32 %v354_v4, 0.0 }
 0x137   :  { %v515_v34 = vmax.f32 %v443_v29, 0.0  ;;  %1428 = vmatpush.bf16.msra.mxu2 %v2186_v25 }
 0x138   :  { %v2940_v39 = vpack.c.bf16 %v514_v31, %v512_v30 }
 0x139   :  { %v2942_v42 = vpack.c.bf16 %v515_v34, %v513_v33  ;;  %v2249_v33 = vld [vmem:[#allocation5 + $0xd0] sm:$0xf]  ;;  %v2346_v34 = vld [vmem:[#allocation5 + $0xd4] sm:$0xf0] }
 0x13a   :  { %823 = vmatmul.bf16.gmra.mxu2 %v2940_v39 }
 0x13b   :  { %912 = vmatmul.bf16.gmra.mxu3 %v2942_v42  ;;  %v356_v46 = vpop.f32.mrf.mxu0 }
 0x13c   :  { %v445_v47 = vpop.f32.mrf.mxu1  ;;  %v357_v58 = vadd.f32 %v356_v46, %v2785_v8  ;;  %v2250_v46 = vor.u32 %v2346_v34, %v2249_v33  ;;  %v369_v34 = vadd.f32 %v2849_v23, %v2785_v8 }
 0x13d   :  { %v784_v52 = vpop.f32.mrf.mxu2  ;;  %v446_v59 = vadd.f32 %v445_v47, %v2793_v12 }
 0x13e   :  { %v785_v53 = vadd.f32 %v784_v52, %v2946_v43  ;;  %v873_v55 = vpop.f32.mrf.mxu3  ;;  %991 = vmatmul.bf16.gmra.mxu0 %v2899_v40  ;;  %v516_v3 = vmax.f32 %v357_v58, 0.0  ;;  %v2329_v52 = vld [vmem:[#allocation5 + $0x54] sm:$0xf]  ;;  %1517 = vmatpush.bf16.msra.mxu3 %v2250_v46 }
 0x13f   :  { %1080 = vmatmul.bf16.gmra.mxu1 %v2901_v41  ;;  %v517_v40 = vmax.f32 %v446_v59, 0.0  ;;  %v2345_v59 = vld [vmem:[#allocation5 + $0xd4] sm:$0xf] }
 0x140   :  { %v874_v57 = vadd.f32 %v873_v55, %v785_v53  ;;  %v2187_v53 = vld [vmem:[#allocation5 + $0x58] sm:$0xf0] }
 0x141   :  { %v2190_v58 = vor.u32 %v2329_v52, %v2187_v53  ;;  %v458_v52 = vadd.f32 %v2852_v26, %v2793_v12 }
 0x142   :  { %v1131_v18 = vmax.f32 %v874_v57, 0.0 }
 0x143   :  { %v358_v60 = vpop.f32.mrf.mxu0  ;;  %1606 = vmatpush.bf16.msra.mxu0 %v2190_v58 }
 0x144   :  { %v359_v49 = vadd.f32 %v358_v60, %v2785_v8  ;;  %v447_v0 = vpop.f32.mrf.mxu1  ;;  %v2251_v60 = vld [vmem:[#allocation5 + $0xd8] sm:$0xf0] }
 0x145   :  { %v448_v1 = vadd.f32 %v447_v0, %v2793_v12  ;;  %v786_v2 = vpop.f32.mrf.mxu2  ;;  %v2254_v0 = vor.u32 %v2345_v59, %v2251_v60  ;;  %v527_v59 = vmax.f32 %v458_v52, 0.0 }
 0x146   :  { %v518_v5 = vmax.f32 %v359_v49, 0.0  ;;  %v787_v7 = vadd.f32 %v786_v2, %v2946_v43  ;;  %v875_v10 = vpop.f32.mrf.mxu3 }
 0x147   :  { %v519_v13 = vmax.f32 %v448_v1, 0.0  ;;  %1695 = vmatpush.bf16.msra.mxu1 %v2254_v0 }
 0x148   :  { %v876_v41 = vadd.f32 %v875_v10, %v787_v7  ;;  %v2957_v14 = vpack.c.bf16 %v518_v5, %v516_v3 }
 0x149   :  { %v2959_v15 = vpack.c.bf16 %v519_v13, %v517_v40 }
 0x14a   :  { %v1133_v19 = vmax.f32 %v876_v41, 0.0  ;;  %828 = vmatmul.bf16.gmra.mxu2 %v2957_v14 }
 0x14b   :  { %917 = vmatmul.bf16.gmra.mxu3 %v2959_v15  ;;  %v361_v24 = vpop.f32.mrf.mxu0 }
 0x14c   :  { %v2963_v4 = vpack.c.bf16 %v1133_v19, %v1131_v18  ;;  %v450_v6 = vpop.f32.mrf.mxu1  ;;  %v362_v47 = vadd.f32 %v361_v24, %v2785_v8  ;;  %v2976_v18 = vperm.slane %v2938_v38, 1 }
 0x14d   :  { %v789_v28 = vpop.f32.mrf.mxu2  ;;  %v451_v55 = vadd.f32 %v450_v6, %v2793_v12 }
 0x14e   :  { %v790_v29 = vadd.f32 %v789_v28, %v2946_v43  ;;  %v878_v30 = vpop.f32.mrf.mxu3  ;;  %996 = vmatmul.bf16.gmra.mxu0 %v2915_v61  ;;  %v520_v2 = vmax.f32 %v362_v47, 0.0  ;;  %v456_v47 = vadd.f32 %v2845_v17, %v2793_v12 }
 0x14f   :  { %1085 = vmatmul.bf16.gmra.mxu1 %v2917_v51  ;;  %v521_v10 = vmax.f32 %v451_v55, 0.0 }
 0x150   :  { %v879_v31 = vadd.f32 %v878_v30, %v790_v29 }
 0x152   :  { %v1135_v20 = vmax.f32 %v879_v31, 0.0  ;;  %v367_v31 = vadd.f32 %v2843_v16, %v2785_v8 }
 0x153   :  { %v363_v57 = vpop.f32.mrf.mxu0 }
 0x154   :  { %v364_v49 = vadd.f32 %v363_v57, %v2785_v8  ;;  %v452_v61 = vpop.f32.mrf.mxu1  ;;  %v524_v55 = vmax.f32 %v367_v31, 0.0  ;;  %v526_v57 = vmax.f32 %v369_v34, 0.0  ;;  %v2241_v31 = vld [vmem:[#allocation5 + $0xc0] sm:$0xf]  ;;  %v2344_v34 = vld [vmem:[#allocation5 + $0xc4] sm:$0xf0] }
 0x155   :  { %v453_v51 = vadd.f32 %v452_v61, %v2793_v12  ;;  %v791_v1 = vpop.f32.mrf.mxu2  ;;  %v2242_v52 = vor.u32 %v2344_v34, %v2241_v31  ;;  %v466_v34 = vadd.f32 %v2876_v56, %v2793_v12 }
 0x156   :  { %v522_v3 = vmax.f32 %v364_v49, 0.0  ;;  %v792_v5 = vadd.f32 %v791_v1, %v2946_v43  ;;  %v880_v7 = vpop.f32.mrf.mxu3  ;;  %v2998_v17 = vpack.c.bf16 %v526_v57, %v524_v55  ;;  %v2343_v57 = vld [vmem:[#allocation5 + $0xc4] sm:$0xf] }
 0x157   :  { %v523_v40 = vmax.f32 %v453_v51, 0.0  ;;  %1518 = vmatpush.bf16.msra.mxu3 %v2242_v52 }
 0x158   :  { %v881_v13 = vadd.f32 %v880_v7, %v792_v5  ;;  %v2973_v41 = vpack.c.bf16 %v522_v3, %v520_v2  ;;  %v2177_v5 = vld [vmem:[#allocation5 + $0x40] sm:$0xf]  ;;  %v2328_v7 = vld [vmem:[#allocation5 + $0x44] sm:$0xf0] }
 0x159   :  { %v2978_v19 = vpack.c.bf16 %v523_v40, %v521_v10  ;;  %v2178_v40 = vor.u32 %v2328_v7, %v2177_v5 }
 0x15a   :  { %v1137_v21 = vmax.f32 %v881_v13, 0.0  ;;  %833 = vmatmul.bf16.gmra.mxu2 %v2973_v41 }
 0x15b   :  { %922 = vmatmul.bf16.gmra.mxu3 %v2978_v19  ;;  %v962_v24 = vpop.f32.mrf.mxu0  ;;  %1429 = vmatpush.bf16.msra.mxu2 %v2178_v40 }
 0x15c   :  { %v963_v25 = vadd.f32 %v962_v24, %v2976_v18  ;;  %v1051_v6 = vpop.f32.mrf.mxu1  ;;  %v2983_v28 = vpack.c.bf16 %v1137_v21, %v1135_v20 }
 0x15d   :  { %v794_v29 = vpop.f32.mrf.mxu2 }
 0x15e   :  { %v1052_v30 = vadd.f32 %v1051_v6, %v963_v25  ;;  %v795_v33 = vadd.f32 %v794_v29, %v2946_v43  ;;  %v883_v38 = vpop.f32.mrf.mxu3  ;;  %1001 = vmatmul.bf16.gmra.mxu0 %v2940_v39 }
 0x15f   :  { %1090 = vmatmul.bf16.gmra.mxu1 %v2942_v42  ;;  %v525_v42 = vmax.f32 %v456_v47, 0.0  ;;  %v463_v47 = vadd.f32 %v2867_v50, %v2793_v12 }
 0x160   :  { %v884_v46 = vadd.f32 %v883_v38, %v795_v33  ;;  %v1132_v61 = vmax.f32 %v1052_v30, 0.0  ;;  %v372_v30 = vadd.f32 %v2855_v36, %v2785_v8  ;;  %v374_v33 = vadd.f32 %v2863_v48, %v2785_v8  ;;  %v2243_v36 = vld [vmem:[#allocation5 + $0xc8] sm:$0xf0] }
 0x161   :  { %v3000_v1 = vpack.c.bf16 %v527_v59, %v525_v42  ;;  %v2246_v59 = vor.u32 %v2343_v57, %v2243_v36 }
 0x162   :  { %v1139_v26 = vmax.f32 %v884_v46, 0.0  ;;  %v461_v46 = vadd.f32 %v2857_v37, %v2793_v12 }
 0x163   :  { %v964_v53 = vpop.f32.mrf.mxu0  ;;  %1696 = vmatpush.bf16.msra.mxu1 %v2246_v59  ;;  %v2233_v59 = vld [vmem:[#allocation5 + $0xb0] sm:$0xf] }
 0x164   :  { %v965_v39 = vadd.f32 %v964_v53, %v2976_v18  ;;  %v1053_v58 = vpop.f32.mrf.mxu1  ;;  %v2327_v53 = vld [vmem:[#allocation5 + $0x44] sm:$0xf] }
 0x165   :  { %v796_v60 = vpop.f32.mrf.mxu2 }
 0x166   :  { %v1054_v16 = vadd.f32 %v1053_v58, %v965_v39  ;;  %v797_v49 = vadd.f32 %v796_v60, %v2946_v43  ;;  %v885_v23 = vpop.f32.mrf.mxu3  ;;  %v528_v39 = vmax.f32 %v372_v30, 0.0  ;;  %v530_v58 = vmax.f32 %v374_v33, 0.0 }
 0x167   :  { %v529_v60 = vmax.f32 %v461_v46, 0.0  ;;  %v377_v33 = vadd.f32 %v2873_v54, %v2785_v8  ;;  %v468_v46 = vadd.f32 %v2889_v11, %v2793_v12  ;;  %v2169_v11 = vld [vmem:[#allocation5 + $0x30] sm:$0xf] }
 0x168   :  { %v1134_v0 = vmax.f32 %v1054_v16, 0.0  ;;  %v886_v51 = vadd.f32 %v885_v23, %v797_v49  ;;  %v531_v16 = vmax.f32 %v463_v47, 0.0 }
 0x169   :  { %v532_v52 = vmax.f32 %v377_v33, 0.0 }
 0x16a   :  { %v3002_v2 = vpack.c.bf16 %v1134_v0, %v1132_v61  ;;  %v1141_v3 = vmax.f32 %v886_v51, 0.0  ;;  %838 = vmatmul.bf16.gmra.mxu2 %v2998_v17 }
 0x16b   :  { %927 = vmatmul.bf16.gmra.mxu3 %v3000_v1  ;;  %v967_v10 = vpop.f32.mrf.mxu0 }
 0x16c   :  { %v968_v13 = vadd.f32 %v967_v10, %v2976_v18  ;;  %v1056_v20 = vpop.f32.mrf.mxu1  ;;  %v3007_v21 = vpack.c.bf16 %v1141_v3, %v1139_v26  ;;  %v3022_v26 = vpack.c.bf16 %v530_v58, %v528_v39  ;;  %v3024_v3 = vpack.c.bf16 %v531_v16, %v529_v60 }
 0x16d   :  { %v799_v24 = vpop.f32.mrf.mxu2 }
 0x16e   :  { %v1057_v25 = vadd.f32 %v1056_v20, %v968_v13  ;;  %v800_v6 = vadd.f32 %v799_v24, %v2946_v43  ;;  %v888_v29 = vpop.f32.mrf.mxu3  ;;  %1006 = vmatmul.bf16.gmra.mxu0 %v2957_v14  ;;  %v2179_v14 = vld [vmem:[#allocation5 + $0x48] sm:$0xf0] }
 0x16f   :  { %1095 = vmatmul.bf16.gmra.mxu1 %v2959_v15  ;;  %v2182_v15 = vor.u32 %v2327_v53, %v2179_v14 }
 0x170   :  { %v889_v38 = vadd.f32 %v888_v29, %v800_v6  ;;  %v1136_v61 = vmax.f32 %v1057_v25, 0.0 }
 0x171   :  { %1607 = vmatpush.bf16.msra.mxu0 %v2182_v15 }
 0x172   :  { %v1143_v5 = vmax.f32 %v889_v38, 0.0  ;;  %v379_v38 = vadd.f32 %v2887_v9, %v2785_v8 }
 0x173   :  { %v969_v55 = vpop.f32.mrf.mxu0 }
 0x174   :  { %v970_v48 = vadd.f32 %v969_v55, %v2976_v18  ;;  %v1058_v42 = vpop.f32.mrf.mxu1  ;;  %v534_v53 = vmax.f32 %v379_v38, 0.0  ;;  %v535_v55 = vmax.f32 %v468_v46, 0.0  ;;  %v473_v46 = vadd.f32 %v2909_v45, %v2793_v12 }
 0x175   :  { %v801_v37 = vpop.f32.mrf.mxu2 }
 0x176   :  { %v1059_v49 = vadd.f32 %v1058_v42, %v970_v48  ;;  %v802_v50 = vadd.f32 %v801_v37, %v2946_v43  ;;  %v890_v23 = vpop.f32.mrf.mxu3  ;;  %v3046_v56 = vpack.c.bf16 %v534_v53, %v532_v52  ;;  %v2326_v42 = vld [vmem:[#allocation5 + $0x34] sm:$0xf0]  ;;  %v2153_v52 = vld [vmem:[#allocation5 + $0x10] sm:$0xf] }
 0x177   :  { %v2170_v37 = vor.u32 %v2326_v42, %v2169_v11  ;;  %v2217_v53 = vld [vmem:[#allocation5 + $0x90] sm:$0xf] }
 0x178   :  { %v1138_v0 = vmax.f32 %v1059_v49, 0.0  ;;  %v891_v51 = vadd.f32 %v890_v23, %v802_v50  ;;  %v2342_v49 = vld [vmem:[#allocation5 + $0xb4] sm:$0xf0] }
 0x179   :  { %1430 = vmatpush.bf16.msra.mxu2 %v2170_v37 }
 0x17a   :  { %v1145_v7 = vmax.f32 %v891_v51, 0.0  ;;  %843 = vmatmul.bf16.gmra.mxu2 %v3022_v26  ;;  %v3027_v10 = vpack.c.bf16 %v1138_v0, %v1136_v61  ;;  %v2234_v61 = vor.u32 %v2342_v49, %v2233_v59  ;;  %v382_v0 = vadd.f32 %v2895_v32, %v2785_v8  ;;  %v2145_v59 = vld [vmem:[#allocation5] sm:$0xf] }
 0x17b   :  { %932 = vmatmul.bf16.gmra.mxu3 %v3024_v3  ;;  %v972_v40 = vpop.f32.mrf.mxu0 }
 0x17c   :  { %v973_v13 = vadd.f32 %v972_v40, %v2976_v18  ;;  %v1061_v20 = vpop.f32.mrf.mxu1  ;;  %v3031_v24 = vpack.c.bf16 %v1145_v7, %v1143_v5  ;;  %v471_v40 = vadd.f32 %v2897_v35, %v2793_v12  ;;  %1519 = vmatpush.bf16.msra.mxu3 %v2234_v61  ;;  %v536_v35 = vmax.f32 %v382_v0, 0.0  ;;  %v2336_v0 = vld [vmem:[#allocation5 + $0x84] sm:$0xf0] }
 0x17d   :  { %v804_v25 = vpop.f32.mrf.mxu2 }
 0x17e   :  { %v1062_v6 = vadd.f32 %v1061_v20, %v973_v13  ;;  %v805_v29 = vadd.f32 %v804_v25, %v2946_v43  ;;  %v893_v30 = vpop.f32.mrf.mxu3  ;;  %1011 = vmatmul.bf16.gmra.mxu0 %v2973_v41  ;;  %v2161_v20 = vld [vmem:[#allocation5 + $0x20] sm:$0xf]  ;;  %v2324_v25 = vld [vmem:[#allocation5 + $0x24] sm:$0xf0] }
 0x17f   :  { %1100 = vmatmul.bf16.gmra.mxu1 %v2978_v19  ;;  %v533_v19 = vmax.f32 %v466_v34, 0.0  ;;  %v2162_v38 = vor.u32 %v2324_v25, %v2161_v20 }
 0x180   :  { %v894_v31 = vadd.f32 %v893_v30, %v805_v29  ;;  %v1140_v36 = vmax.f32 %v1062_v6, 0.0  ;;  %v2225_v6 = vld [vmem:[#allocation5 + $0xa0] sm:$0xf]  ;;  %v384_v29 = vadd.f32 %v2907_v44, %v2785_v8  ;;  %v2322_v44 = vld [vmem:[#allocation5 + $0x14] sm:$0xf0] }
 0x181   :  { %v3048_v48 = vpack.c.bf16 %v535_v55, %v533_v19  ;;  %1431 = vmatpush.bf16.msra.mxu2 %v2162_v38  ;;  %v2325_v19 = vld [vmem:[#allocation5 + $0x34] sm:$0xf]  ;;  %v2171_v55 = vld [vmem:[#allocation5 + $0x38] sm:$0xf0] }
 0x182   :  { %v1147_v60 = vmax.f32 %v894_v31, 0.0  ;;  %v2340_v31 = vld [vmem:[#allocation5 + $0xa4] sm:$0xf0] }
 0x183   :  { %v974_v47 = vpop.f32.mrf.mxu0  ;;  %v2226_v34 = vor.u32 %v2340_v31, %v2225_v6 }
 0x184   :  { %v975_v41 = vadd.f32 %v974_v47, %v2976_v18  ;;  %v1063_v14 = vpop.f32.mrf.mxu1 }
 0x185   :  { %v806_v15 = vpop.f32.mrf.mxu2  ;;  %1520 = vmatpush.bf16.msra.mxu3 %v2226_v34 }
 0x186   :  { %v1064_v54 = vadd.f32 %v1063_v14, %v975_v41  ;;  %v807_v57 = vadd.f32 %v806_v15, %v2946_v43  ;;  %v895_v9 = vpop.f32.mrf.mxu3  ;;  %v537_v41 = vmax.f32 %v471_v40, 0.0  ;;  %v538_v14 = vmax.f32 %v384_v29, 0.0 }
 0x188   :  { %v1142_v39 = vmax.f32 %v1064_v54, 0.0  ;;  %v896_v58 = vadd.f32 %v895_v9, %v807_v57  ;;  %v2174_v54 = vor.u32 %v2325_v19, %v2171_v55  ;;  %v2341_v57 = vld [vmem:[#allocation5 + $0xb4] sm:$0xf]  ;;  %v2338_v9 = vld [vmem:[#allocation5 + $0x94] sm:$0xf0]  ;;  %v3070_v20 = vpack.c.bf16 %v538_v14, %v536_v35 }
 0x189   :  { %v2218_v11 = vor.u32 %v2338_v9, %v2217_v53  ;;  %v478_v14 = vadd.f32 %v2932_v27, %v2793_v12 }
 0x18a   :  { %v1149_v16 = vmax.f32 %v896_v58, 0.0  ;;  %848 = vmatmul.bf16.gmra.mxu2 %v3046_v56  ;;  %v3051_v50 = vpack.c.bf16 %v1142_v39, %v1140_v36  ;;  %v539_v36 = vmax.f32 %v473_v46, 0.0  ;;  %1608 = vmatpush.bf16.msra.mxu0 %v2174_v54 }
 0x18b   :  { %937 = vmatmul.bf16.gmra.mxu3 %v3048_v48  ;;  %v977_v23 = vpop.f32.mrf.mxu0  ;;  %v543_v54 = vmax.f32 %v478_v14, 0.0 }
 0x18c   :  { %v978_v51 = vadd.f32 %v977_v23, %v2976_v18  ;;  %v1066_v5 = vpop.f32.mrf.mxu1  ;;  %v3057_v7 = vpack.c.bf16 %v1149_v16, %v1147_v60  ;;  %v2320_v60 = vld [vmem:[#allocation5 + $0x4] sm:$0xf0]  ;;  %v2209_v16 = vld [vmem:[#allocation5 + $0x80] sm:$0xf]  ;;  %1521 = vmatpush.bf16.msra.mxu3 %v2218_v11  ;;  %v3072_v25 = vpack.c.bf16 %v539_v36, %v537_v41  ;;  %v476_v41 = vadd.f32 %v2922_v63, %v2793_v12 }
 0x18d   :  { %v809_v13 = vpop.f32.mrf.mxu2  ;;  %v2146_v61 = vor.u32 %v2320_v60, %v2145_v59 }
 0x18e   :  { %v1067_v30 = vadd.f32 %v1066_v5, %v978_v51  ;;  %v810_v32 = vadd.f32 %v809_v13, %v2946_v43  ;;  %v898_v33 = vpop.f32.mrf.mxu3  ;;  %1016 = vmatmul.bf16.gmra.mxu0 %v2998_v17  ;;  %v2154_v17 = vor.u32 %v2322_v44, %v2153_v52  ;;  %v2210_v51 = vor.u32 %v2336_v0, %v2209_v16  ;;  %v2163_v0 = vld [vmem:[#allocation5 + $0x28] sm:$0xf0] }
 0x18f   :  { %1105 = vmatmul.bf16.gmra.mxu1 %v3000_v1  ;;  %v2235_v1 = vld [vmem:[#allocation5 + $0xb8] sm:$0xf0]  ;;  %v389_v44 = vadd.f32 %v2929_v22, %v2785_v8 }
 0x190   :  { %v899_v47 = vadd.f32 %v898_v33, %v810_v32  ;;  %v2238_v58 = vor.u32 %v2341_v57, %v2235_v1  ;;  %1432 = vmatpush.bf16.msra.mxu2 %v2154_v17  ;;  %v1144_v5 = vmax.f32 %v1067_v30, 0.0  ;;  %1522 = vmatpush.bf16.msra.mxu3 %v2210_v51  ;;  %v2339_v51 = vld [vmem:[#allocation5 + $0xa4] sm:$0xf] }
 0x191   :  { %v542_v17 = vmax.f32 %v389_v44, 0.0 }
 0x192   :  { %1697 = vmatpush.bf16.msra.mxu1 %v2238_v58  ;;  %v1151_v6 = vmax.f32 %v899_v47, 0.0  ;;  %v387_v47 = vadd.f32 %v2919_v62, %v2785_v8 }
 0x193   :  { %v979_v15 = vpop.f32.mrf.mxu0 }
 0x194   :  { %v980_v39 = vadd.f32 %v979_v15, %v2976_v18  ;;  %v1068_v45 = vpop.f32.mrf.mxu1  ;;  %1433 = vmatpush.bf16.msra.mxu2 %v2146_v61  ;;  %v540_v55 = vmax.f32 %v387_v47, 0.0  ;;  %v2323_v61 = vld [vmem:[#allocation5 + $0x24] sm:$0xf]  ;;  %v2219_v47 = vld [vmem:[#allocation5 + $0x98] sm:$0xf0] }
 0x195   :  { %v811_v42 = vpop.f32.mrf.mxu2 }
 0x196   :  { %v1069_v37 = vadd.f32 %v1068_v45, %v980_v39  ;;  %v812_v49 = vadd.f32 %v811_v42, %v2946_v43  ;;  %v900_v23 = vpop.f32.mrf.mxu3  ;;  %v3094_v63 = vpack.c.bf16 %v542_v17, %v540_v55  ;;  %v2147_v55 = vld [vmem:[#allocation5 + $0x8] sm:$0xf0]  ;;  %v2335_v17 = vld [vmem:[#allocation5 + $0x84] sm:$0xf] }
 0x198   :  { %v1146_v40 = vmax.f32 %v1069_v37, 0.0  ;;  %v901_v13 = vadd.f32 %v900_v23, %v812_v49 }
 0x19a   :  { %v1153_v29 = vmax.f32 %v901_v13, 0.0  ;;  %853 = vmatmul.bf16.gmra.mxu2 %v3070_v20  ;;  %v3075_v32 = vpack.c.bf16 %v1146_v40, %v1144_v5  ;;  %v2166_v5 = vor.u32 %v2323_v61, %v2163_v0  ;;  %v2227_v40 = vld [vmem:[#allocation5 + $0xa8] sm:$0xf0] }
 0x19b   :  { %942 = vmatmul.bf16.gmra.mxu3 %v3072_v25  ;;  %v982_v33 = vpop.f32.mrf.mxu0 }
 0x19c   :  { %v983_v38 = vadd.f32 %v982_v33, %v2976_v18  ;;  %v1071_v30 = vpop.f32.mrf.mxu1  ;;  %v3079_v31 = vpack.c.bf16 %v1153_v29, %v1151_v6  ;;  %v2230_v6 = vor.u32 %v2339_v51, %v2227_v40  ;;  %1609 = vmatpush.bf16.msra.mxu0 %v2166_v5 }
 0x19d   :  { %v814_v34 = vpop.f32.mrf.mxu2 }
 0x19e   :  { %v1072_v35 = vadd.f32 %v1071_v30, %v983_v38  ;;  %v815_v46 = vadd.f32 %v814_v34, %v2946_v43  ;;  %v903_v52 = vpop.f32.mrf.mxu3  ;;  %1021 = vmatmul.bf16.gmra.mxu0 %v3022_v26  ;;  %1698 = vmatpush.bf16.msra.mxu1 %v2230_v6  ;;  %v2321_v30 = vld [vmem:[#allocation5 + $0x14] sm:$0xf]  ;;  %v2155_v34 = vld [vmem:[#allocation5 + $0x18] sm:$0xf0] }
 0x19f   :  { %1110 = vmatmul.bf16.gmra.mxu1 %v3024_v3  ;;  %v541_v3 = vmax.f32 %v476_v41, 0.0 }
 0x1a0   :  { %v904_v53 = vadd.f32 %v903_v52, %v815_v46  ;;  %v1148_v22 = vmax.f32 %v1072_v35, 0.0  ;;  %v2337_v35 = vld [vmem:[#allocation5 + $0x94] sm:$0xf]  ;;  %v2158_v52 = vor.u32 %v2321_v30, %v2155_v34 }
 0x1a1   :  { %v3096_v39 = vpack.c.bf16 %v543_v54, %v541_v3  ;;  %v2222_v44 = vor.u32 %v2337_v35, %v2219_v47  ;;  %v2211_v54 = vld [vmem:[#allocation5 + $0x88] sm:$0xf0] }
 0x1a2   :  { %v1155_v12 = vmax.f32 %v904_v53, 0.0  ;;  %1610 = vmatpush.bf16.msra.mxu0 %v2158_v52 }
 0x1a3   :  { %v984_v19 = vpop.f32.mrf.mxu0  ;;  %1699 = vmatpush.bf16.msra.mxu1 %v2222_v44 }
 0x1a4   :  { %v985_v26 = vadd.f32 %v984_v19, %v2976_v18  ;;  %v1073_v15 = vpop.f32.mrf.mxu1  ;;  %v2319_v19 = vld [vmem:[#allocation5 + $0x4] sm:$0xf] }
 0x1a5   :  { %v816_v57 = vpop.f32.mrf.mxu2  ;;  %v2150_v3 = vor.u32 %v2319_v19, %v2147_v55 }
 0x1a6   :  { %v1074_v62 = vadd.f32 %v1073_v15, %v985_v26  ;;  %v817_v1 = vadd.f32 %v816_v57, %v2946_v43  ;;  %v905_v8 = vpop.f32.mrf.mxu3 }
 0x1a7   :  { %1611 = vmatpush.bf16.msra.mxu0 %v2150_v3 }
 0x1a8   :  { %v1150_v9 = vmax.f32 %v1074_v62, 0.0  ;;  %v906_v36 = vadd.f32 %v905_v8, %v817_v1  ;;  %v2214_v1 = vor.u32 %v2335_v17, %v2211_v54 }
 0x1aa   :  { %v1157_v27 = vmax.f32 %v906_v36, 0.0  ;;  %858 = vmatmul.bf16.gmra.mxu2 %v3094_v63  ;;  %v3099_v45 = vpack.c.bf16 %v1150_v9, %v1148_v22  ;;  %1700 = vmatpush.bf16.msra.mxu1 %v2214_v1 }
 0x1ab   :  { %947 = vmatmul.bf16.gmra.mxu3 %v3096_v39  ;;  %v987_v58 = vpop.f32.mrf.mxu0 }
 0x1ac   :  { %v988_v11 = vadd.f32 %v987_v58, %v2976_v18  ;;  %v1076_v42 = vpop.f32.mrf.mxu1  ;;  %v3103_v59 = vpack.c.bf16 %v1157_v27, %v1155_v12 }
 0x1ad   :  { %v819_v60 = vpop.f32.mrf.mxu2 }
 0x1ae   :  { %v1077_v16 = vadd.f32 %v1076_v42, %v988_v11  ;;  %v820_v37 = vadd.f32 %v819_v60, %v2946_v43  ;;  %v908_v49 = vpop.f32.mrf.mxu3  ;;  %1026 = vmatmul.bf16.gmra.mxu0 %v3046_v56 }
 0x1af   :  { %1115 = vmatmul.bf16.gmra.mxu1 %v3048_v48 }
 0x1b0   :  { %v909_v23 = vadd.f32 %v908_v49, %v820_v37  ;;  %v1152_v53 = vmax.f32 %v1077_v16, 0.0 }
 0x1b2   :  { %v1159_v26 = vmax.f32 %v909_v23, 0.0 }
 0x1b3   :  { %v989_v13 = vpop.f32.mrf.mxu0 }
 0x1b4   :  { %v990_v29 = vadd.f32 %v989_v13, %v2976_v18  ;;  %v1078_v33 = vpop.f32.mrf.mxu1 }
 0x1b5   :  { %v821_v38 = vpop.f32.mrf.mxu2 }
 0x1b6   :  { %v1079_v56 = vadd.f32 %v1078_v33, %v990_v29  ;;  %v822_v48 = vadd.f32 %v821_v38, %v2946_v43  ;;  %v910_v46 = vpop.f32.mrf.mxu3 }
 0x1b8   :  { %v1154_v41 = vmax.f32 %v1079_v56, 0.0  ;;  %v911_v14 = vadd.f32 %v910_v46, %v822_v48 }
 0x1ba   :  { %v1161_v15 = vmax.f32 %v911_v14, 0.0  ;;  %1434 = vmatmul.bf16.vlgmr.msra.gmra.mxu2 %v2963_v4  ;;  %v3111_v57 = vpack.c.bf16 %v1154_v41, %v1152_v53 }
 0x1bb   :  { %1523 = vmatmul.bf16.vlgmr.msra.gmra.mxu3 %v3002_v2  ;;  %v992_v62 = vpop.f32.mrf.mxu0 }
 0x1bc   :  { %v993_v8 = vadd.f32 %v992_v62, %v2976_v18  ;;  %v1081_v22 = vpop.f32.mrf.mxu1  ;;  %v3115_v9 = vpack.c.bf16 %v1161_v15, %v1159_v26 }
 0x1bd   :  { %v824_v36 = vpop.f32.mrf.mxu2 }
 0x1be   :  { %v1082_v12 = vadd.f32 %v1081_v22, %v993_v8  ;;  %v825_v27 = vadd.f32 %v824_v36, %v2946_v43  ;;  %v913_v58 = vpop.f32.mrf.mxu3  ;;  %1031 = vmatmul.bf16.gmra.mxu0 %v3070_v20 }
 0x1bf   :  { %1120 = vmatmul.bf16.gmra.mxu1 %v3072_v25 }
 0x1c0   :  { %v914_v11 = vadd.f32 %v913_v58, %v825_v27  ;;  %v1156_v0 = vmax.f32 %v1082_v12, 0.0 }
 0x1c2   :  { %v1163_v40 = vmax.f32 %v914_v11, 0.0 }
 0x1c3   :  { %v994_v42 = vpop.f32.mrf.mxu0 }
 0x1c4   :  { %v995_v60 = vadd.f32 %v994_v42, %v2976_v18  ;;  %v1083_v16 = vpop.f32.mrf.mxu1 }
 0x1c5   :  { %v826_v37 = vpop.f32.mrf.mxu2 }
 0x1c6   :  { %v1084_v49 = vadd.f32 %v1083_v16, %v995_v60  ;;  %v827_v23 = vadd.f32 %v826_v37, %v2946_v43  ;;  %v915_v61 = vpop.f32.mrf.mxu3 }
 0x1c8   :  { %v1158_v51 = vmax.f32 %v1084_v49, 0.0  ;;  %v916_v5 = vadd.f32 %v915_v61, %v827_v23 }
 0x1ca   :  { %v1165_v13 = vmax.f32 %v916_v5, 0.0  ;;  %1439 = vmatmul.bf16.gmra.mxu2 %v2983_v28  ;;  %v3123_v20 = vpack.c.bf16 %v1158_v51, %v1156_v0 }
 0x1cb   :  { %1528 = vmatmul.bf16.gmra.mxu3 %v3027_v10  ;;  %v997_v25 = vpop.f32.mrf.mxu0 }
 0x1cc   :  { %v998_v6 = vadd.f32 %v997_v25, %v2976_v18  ;;  %v1086_v29 = vpop.f32.mrf.mxu1  ;;  %v3127_v33 = vpack.c.bf16 %v1165_v13, %v1163_v40 }
 0x1cd   :  { %v829_v38 = vpop.f32.mrf.mxu2 }
 0x1ce   :  { %v1087_v30 = vadd.f32 %v1086_v29, %v998_v6  ;;  %v830_v34 = vadd.f32 %v829_v38, %v2946_v43  ;;  %v918_v35 = vpop.f32.mrf.mxu3  ;;  %1036 = vmatmul.bf16.gmra.mxu0 %v3094_v63 }
 0x1cf   :  { %1125 = vmatmul.bf16.gmra.mxu1 %v3096_v39 }
 0x1d0   :  { %v919_v56 = vadd.f32 %v918_v35, %v830_v34  ;;  %v1160_v14 = vmax.f32 %v1087_v30, 0.0 }
 0x1d2   :  { %v1167_v17 = vmax.f32 %v919_v56, 0.0 }
 0x1d3   :  { %v999_v48 = vpop.f32.mrf.mxu0 }
 0x1d4   :  { %v1000_v46 = vadd.f32 %v999_v48, %v2976_v18  ;;  %v1088_v52 = vpop.f32.mrf.mxu1 }
 0x1d5   :  { %v831_v47 = vpop.f32.mrf.mxu2 }
 0x1d6   :  { %v1089_v44 = vadd.f32 %v1088_v52, %v1000_v46  ;;  %v832_v53 = vadd.f32 %v831_v47, %v2946_v43  ;;  %v920_v41 = vpop.f32.mrf.mxu3 }
 0x1d8   :  { %v1162_v19 = vmax.f32 %v1089_v44, 0.0  ;;  %v921_v55 = vadd.f32 %v920_v41, %v832_v53 }
 0x1da   :  { %v1169_v26 = vmax.f32 %v921_v55, 0.0  ;;  %1444 = vmatmul.bf16.gmra.mxu2 %v3007_v21  ;;  %v3135_v63 = vpack.c.bf16 %v1162_v19, %v1160_v14 }
 0x1db   :  { %1533 = vmatmul.bf16.gmra.mxu3 %v3051_v50  ;;  %v1002_v39 = vpop.f32.mrf.mxu0 }
 0x1dc   :  { %v1003_v15 = vadd.f32 %v1002_v39, %v2976_v18  ;;  %v1091_v3 = vpop.f32.mrf.mxu1  ;;  %v3139_v54 = vpack.c.bf16 %v1169_v26, %v1167_v17 }
 0x1dd   :  { %v834_v62 = vpop.f32.mrf.mxu2 }
 0x1de   :  { %v1092_v1 = vadd.f32 %v1091_v3, %v1003_v15  ;;  %v835_v8 = vadd.f32 %v834_v62, %v2946_v43  ;;  %v923_v22 = vpop.f32.mrf.mxu3  ;;  %1612 = vmatmul.bf16.vlgmr.msra.gmra.mxu0 %v2963_v4 }
 0x1df   :  { %1701 = vmatmul.bf16.vlgmr.msra.gmra.mxu1 %v3002_v2 }
 0x1e0   :  { %v924_v36 = vadd.f32 %v923_v22, %v835_v8  ;;  %v1164_v37 = vmax.f32 %v1092_v1, 0.0 }
 0x1e2   :  { %v1171_v61 = vmax.f32 %v924_v36, 0.0 }
 0x1e3   :  { %v1004_v12 = vpop.f32.mrf.mxu0 }
 0x1e4   :  { %v1005_v27 = vadd.f32 %v1004_v12, %v2976_v18  ;;  %v1093_v58 = vpop.f32.mrf.mxu1 }
 0x1e5   :  { %v836_v11 = vpop.f32.mrf.mxu2 }
 0x1e6   :  { %v1094_v42 = vadd.f32 %v1093_v58, %v1005_v27  ;;  %v837_v60 = vadd.f32 %v836_v11, %v2946_v43  ;;  %v925_v16 = vpop.f32.mrf.mxu3 }
 0x1e8   :  { %v1166_v49 = vmax.f32 %v1094_v42, 0.0  ;;  %v926_v23 = vadd.f32 %v925_v16, %v837_v60 }
 0x1ea   :  { %v1173_v0 = vmax.f32 %v926_v23, 0.0  ;;  %1449 = vmatmul.bf16.gmra.mxu2 %v3031_v24  ;;  %v3147_v4 = vpack.c.bf16 %v1166_v49, %v1164_v37 }
 0x1eb   :  { %1538 = vmatmul.bf16.gmra.mxu3 %v3075_v32  ;;  %v1007_v2 = vpop.f32.mrf.mxu0 }
 0x1ec   :  { %v1008_v51 = vadd.f32 %v1007_v2, %v2976_v18  ;;  %v1096_v5 = vpop.f32.mrf.mxu1  ;;  %v3151_v40 = vpack.c.bf16 %v1173_v0, %v1171_v61 }
 0x1ed   :  { %v839_v13 = vpop.f32.mrf.mxu2 }
 0x1ee   :  { %v1097_v25 = vadd.f32 %v1096_v5, %v1008_v51  ;;  %v840_v6 = vadd.f32 %v839_v13, %v2946_v43  ;;  %v928_v29 = vpop.f32.mrf.mxu3  ;;  %1617 = vmatmul.bf16.gmra.mxu0 %v2983_v28 }
 0x1ef   :  { %1706 = vmatmul.bf16.gmra.mxu1 %v3027_v10 }
 0x1f0   :  { %v929_v38 = vadd.f32 %v928_v29, %v840_v6  ;;  %v1168_v47 = vmax.f32 %v1097_v25, 0.0 }
 0x1f2   :  { %v1175_v41 = vmax.f32 %v929_v38, 0.0 }
 0x1f3   :  { %v1009_v30 = vpop.f32.mrf.mxu0 }
 0x1f4   :  { %v1010_v34 = vadd.f32 %v1009_v30, %v2976_v18  ;;  %v1098_v35 = vpop.f32.mrf.mxu1 }
 0x1f5   :  { %v841_v56 = vpop.f32.mrf.mxu2 }
 0x1f6   :  { %v1099_v48 = vadd.f32 %v1098_v35, %v1010_v34  ;;  %v842_v46 = vadd.f32 %v841_v56, %v2946_v43  ;;  %v930_v52 = vpop.f32.mrf.mxu3 }
 0x1f8   :  { %v1170_v44 = vmax.f32 %v1099_v48, 0.0  ;;  %v931_v53 = vadd.f32 %v930_v52, %v842_v46 }
 0x1fa   :  { %v1177_v14 = vmax.f32 %v931_v53, 0.0  ;;  %1454 = vmatmul.bf16.gmra.mxu2 %v3057_v7  ;;  %v3159_v28 = vpack.c.bf16 %v1170_v44, %v1168_v47 }
 0x1fb   :  { %1543 = vmatmul.bf16.gmra.mxu3 %v3099_v45  ;;  %v1012_v10 = vpop.f32.mrf.mxu0 }
 0x1fc   :  { %v1013_v19 = vadd.f32 %v1012_v10, %v2976_v18  ;;  %v1101_v55 = vpop.f32.mrf.mxu1  ;;  %v3163_v17 = vpack.c.bf16 %v1177_v14, %v1175_v41 }
 0x1fd   :  { %v844_v26 = vpop.f32.mrf.mxu2 }
 0x1fe   :  { %v1102_v39 = vadd.f32 %v1101_v55, %v1013_v19  ;;  %v845_v15 = vadd.f32 %v844_v26, %v2946_v43  ;;  %v933_v3 = vpop.f32.mrf.mxu3  ;;  %1622 = vmatmul.bf16.gmra.mxu0 %v3007_v21 }
 0x1ff   :  { %1711 = vmatmul.bf16.gmra.mxu1 %v3051_v50 }
 0x200   :  { %v934_v62 = vadd.f32 %v933_v3, %v845_v15  ;;  %v1172_v11 = vmax.f32 %v1102_v39, 0.0 }
 0x202   :  { %v1179_v16 = vmax.f32 %v934_v62, 0.0 }
 0x203   :  { %v1014_v1 = vpop.f32.mrf.mxu0 }
 0x204   :  { %v1015_v8 = vadd.f32 %v1014_v1, %v2976_v18  ;;  %v1103_v22 = vpop.f32.mrf.mxu1 }
 0x205   :  { %v846_v36 = vpop.f32.mrf.mxu2 }
 0x206   :  { %v1104_v12 = vadd.f32 %v1103_v22, %v1015_v8  ;;  %v847_v27 = vadd.f32 %v846_v36, %v2946_v43  ;;  %v935_v58 = vpop.f32.mrf.mxu3 }
 0x208   :  { %v1174_v42 = vmax.f32 %v1104_v12, 0.0  ;;  %v936_v60 = vadd.f32 %v935_v58, %v847_v27 }
 0x20a   :  { %v1181_v37 = vmax.f32 %v936_v60, 0.0  ;;  %1459 = vmatmul.bf16.gmra.mxu2 %v3079_v31  ;;  %v3171_v21 = vpack.c.bf16 %v1174_v42, %v1172_v11 }
 0x20b   :  { %1548 = vmatmul.bf16.gmra.mxu3 %v3111_v57  ;;  %v1017_v50 = vpop.f32.mrf.mxu0 }
 0x20c   :  { %v1018_v49 = vadd.f32 %v1017_v50, %v2976_v18  ;;  %v1106_v23 = vpop.f32.mrf.mxu1  ;;  %v3175_v61 = vpack.c.bf16 %v1181_v37, %v1179_v16 }
 0x20d   :  { %v849_v0 = vpop.f32.mrf.mxu2 }
 0x20e   :  { %v1107_v2 = vadd.f32 %v1106_v23, %v1018_v49  ;;  %v850_v51 = vadd.f32 %v849_v0, %v2946_v43  ;;  %v938_v5 = vpop.f32.mrf.mxu3  ;;  %1627 = vmatmul.bf16.gmra.mxu0 %v3031_v24 }
 0x20f   :  { %1716 = vmatmul.bf16.gmra.mxu1 %v3075_v32 }
 0x210   :  { %v939_v13 = vadd.f32 %v938_v5, %v850_v51  ;;  %v1176_v56 = vmax.f32 %v1107_v2, 0.0 }
 0x212   :  { %v1183_v52 = vmax.f32 %v939_v13, 0.0 }
 0x213   :  { %v1019_v25 = vpop.f32.mrf.mxu0 }
 0x214   :  { %v1020_v6 = vadd.f32 %v1019_v25, %v2976_v18  ;;  %v1108_v29 = vpop.f32.mrf.mxu1 }
 0x215   :  { %v851_v38 = vpop.f32.mrf.mxu2 }
 0x216   :  { %v1109_v30 = vadd.f32 %v1108_v29, %v1020_v6  ;;  %v852_v34 = vadd.f32 %v851_v38, %v2946_v43  ;;  %v940_v35 = vpop.f32.mrf.mxu3  ;;  %v2142_v38 = vld [vmem:[%s3432_s5 + $0x2] ss:$8 sm:$0x3] }
 0x218   :  { %v1178_v48 = vmax.f32 %v1109_v30, 0.0  ;;  %v941_v46 = vadd.f32 %v940_v35, %v852_v34 }
 0x21a   :  { %v1185_v47 = vmax.f32 %v941_v46, 0.0  ;;  %1464 = vmatmul.bf16.gmra.mxu2 %v3103_v59  ;;  %v3183_v24 = vpack.c.bf16 %v1178_v48, %v1176_v56 }
 0x21b   :  { %1553 = vmatmul.bf16.gmra.mxu3 %v3123_v20  ;;  %v1022_v32 = vpop.f32.mrf.mxu0 }
 0x21c   :  { %v1023_v44 = vadd.f32 %v1022_v32, %v2976_v18  ;;  %v1111_v53 = vpop.f32.mrf.mxu1  ;;  %v3187_v41 = vpack.c.bf16 %v1185_v47, %v1183_v52 }
 0x21d   :  { %v854_v14 = vpop.f32.mrf.mxu2 }
 0x21e   :  { %v1112_v10 = vadd.f32 %v1111_v53, %v1023_v44  ;;  %v855_v19 = vadd.f32 %v854_v14, %v2946_v43  ;;  %v943_v55 = vpop.f32.mrf.mxu3  ;;  %1632 = vmatmul.bf16.gmra.mxu0 %v3057_v7 }
 0x21f   :  { %1721 = vmatmul.bf16.gmra.mxu1 %v3099_v45 }
 0x220   :  { %v944_v26 = vadd.f32 %v943_v55, %v855_v19  ;;  %v1180_v36 = vmax.f32 %v1112_v10, 0.0 }
 0x222   :  { %v1187_v58 = vmax.f32 %v944_v26, 0.0 }
 0x223   :  { %v1024_v39 = vpop.f32.mrf.mxu0 }
 0x224   :  { %v1025_v15 = vadd.f32 %v1024_v39, %v2976_v18  ;;  %v1113_v3 = vpop.f32.mrf.mxu1 }
 0x225   :  { %v856_v62 = vpop.f32.mrf.mxu2 }
 0x226   :  { %v1114_v1 = vadd.f32 %v1113_v3, %v1025_v15  ;;  %v857_v8 = vadd.f32 %v856_v62, %v2946_v43  ;;  %v945_v22 = vpop.f32.mrf.mxu3 }
 0x228   :  { %v1182_v12 = vmax.f32 %v1114_v1, 0.0  ;;  %v946_v27 = vadd.f32 %v945_v22, %v857_v8 }
 0x22a   :  { %v1189_v11 = vmax.f32 %v946_v27, 0.0  ;;  %1469 = vmatmul.bf16.gmra.mxu2 %v3115_v9  ;;  %v3195_v7 = vpack.c.bf16 %v1182_v12, %v1180_v36 }
 0x22b   :  { %1558 = vmatmul.bf16.gmra.mxu3 %v3135_v63  ;;  %v1027_v45 = vpop.f32.mrf.mxu0 }
 0x22c   :  { %v1028_v42 = vadd.f32 %v1027_v45, %v2976_v18  ;;  %v1116_v60 = vpop.f32.mrf.mxu1  ;;  %v3199_v16 = vpack.c.bf16 %v1189_v11, %v1187_v58 }
 0x22d   :  { %v859_v37 = vpop.f32.mrf.mxu2 }
 0x22e   :  { %v1117_v50 = vadd.f32 %v1116_v60, %v1028_v42  ;;  %v860_v49 = vadd.f32 %v859_v37, %v2946_v43  ;;  %v948_v23 = vpop.f32.mrf.mxu3  ;;  %1637 = vmatmul.bf16.gmra.mxu0 %v3079_v31 }
 0x22f   :  { %1726 = vmatmul.bf16.gmra.mxu1 %v3111_v57  ;;  %v3210_v57 = vperm.slane %v2142_v38, 0 }
 0x230   :  { %v949_v0 = vadd.f32 %v948_v23, %v860_v49  ;;  %v1184_v30 = vmax.f32 %v1117_v50, 0.0 }
 0x232   :  { %v1191_v31 = vmax.f32 %v949_v0, 0.0 }
 0x233   :  { %v1029_v2 = vpop.f32.mrf.mxu0 }
 0x234   :  { %v1030_v51 = vadd.f32 %v1029_v2, %v2976_v18  ;;  %v1118_v5 = vpop.f32.mrf.mxu1 }
 0x235   :  { %v861_v13 = vpop.f32.mrf.mxu2 }
 0x236   :  { %v1119_v25 = vadd.f32 %v1118_v5, %v1030_v51  ;;  %v862_v6 = vadd.f32 %v861_v13, %v2946_v43  ;;  %v950_v29 = vpop.f32.mrf.mxu3 }
 0x238   :  { %v1186_v34 = vmax.f32 %v1119_v25, 0.0  ;;  %v951_v35 = vadd.f32 %v950_v29, %v862_v6 }
 0x23a   :  { %v1193_v56 = vmax.f32 %v951_v35, 0.0  ;;  %1474 = vmatmul.bf16.gmra.mxu2 %v3127_v33  ;;  %v3212_v48 = vpack.c.bf16 %v1186_v34, %v1184_v30  ;;  %v3235_v30 = vperm.slane %v2142_v38, 1 }
 0x23b   :  { %1563 = vmatmul.bf16.gmra.mxu3 %v3147_v4  ;;  %v1032_v46 = vpop.f32.mrf.mxu0 }
 0x23c   :  { %v1033_v43 = vadd.f32 %v1032_v46, %v2976_v18  ;;  %v1121_v52 = vpop.f32.mrf.mxu1  ;;  %v3216_v47 = vpack.c.bf16 %v1193_v56, %v1191_v31 }
 0x23d   :  { %v1435_v32 = vpop.f32.mrf.mxu2 }
 0x23e   :  { %v1122_v44 = vadd.f32 %v1121_v52, %v1033_v43  ;;  %v1436_v53 = vadd.f32 %v1435_v32, %v3210_v57  ;;  %v1524_v14 = vpop.f32.mrf.mxu3  ;;  %1642 = vmatmul.bf16.gmra.mxu0 %v3103_v59 }
 0x23f   :  { %1731 = vmatmul.bf16.gmra.mxu1 %v3123_v20 }
 0x240   :  { %v1525_v10 = vadd.f32 %v1524_v14, %v1436_v53  ;;  %v1188_v1 = vmax.f32 %v1122_v44, 0.0 }
 0x242   :  { %v1782_v36 = vmax.f32 %v1525_v10, 0.0 }
 0x243   :  { %v1034_v19 = vpop.f32.mrf.mxu0 }
 0x244   :  { %v1035_v55 = vadd.f32 %v1034_v19, %v2976_v18  ;;  %v1123_v26 = vpop.f32.mrf.mxu1 }
 0x245   :  { %v1437_v39 = vpop.f32.mrf.mxu2 }
 0x246   :  { %v1124_v15 = vadd.f32 %v1123_v26, %v1035_v55  ;;  %v1438_v3 = vadd.f32 %v1437_v39, %v3210_v57  ;;  %v1526_v62 = vpop.f32.mrf.mxu3 }
 0x248   :  { %v1190_v8 = vmax.f32 %v1124_v15, 0.0  ;;  %v1527_v22 = vadd.f32 %v1526_v62, %v1438_v3 }
 0x24a   :  { %v1784_v12 = vmax.f32 %v1527_v22, 0.0  ;;  %1479 = vmatmul.bf16.gmra.mxu2 %v3139_v54  ;;  %v3224_v59 = vpack.c.bf16 %v1190_v8, %v1188_v1 }
 0x24b   :  { %1568 = vmatmul.bf16.gmra.mxu3 %v3159_v28  ;;  %v1037_v20 = vpop.f32.mrf.mxu0 }
 0x24c   :  { %v1038_v27 = vadd.f32 %v1037_v20, %v2976_v18  ;;  %v1126_v58 = vpop.f32.mrf.mxu1  ;;  %v3228_v11 = vpack.c.bf16 %v1784_v12, %v1782_v36 }
 0x24d   :  { %v1440_v45 = vpop.f32.mrf.mxu2 }
 0x24e   :  { %v1127_v42 = vadd.f32 %v1126_v58, %v1038_v27  ;;  %v1441_v60 = vadd.f32 %v1440_v45, %v3210_v57  ;;  %v1529_v37 = vpop.f32.mrf.mxu3  ;;  %1647 = vmatmul.bf16.gmra.mxu0 %v3115_v9 }
 0x24f   :  { %1736 = vmatmul.bf16.gmra.mxu1 %v3135_v63 }
 0x250   :  { %v1530_v50 = vadd.f32 %v1529_v37, %v1441_v60  ;;  %v1192_v25 = vmax.f32 %v1127_v42, 0.0 }
 0x252   :  { %v1786_v34 = vmax.f32 %v1530_v50, 0.0 }
 0x253   :  { %v1039_v49 = vpop.f32.mrf.mxu0 }
 0x254   :  { %v1040_v23 = vadd.f32 %v1039_v49, %v2976_v18  ;;  %v1128_v0 = vpop.f32.mrf.mxu1 }
 0x255   :  { %v1442_v2 = vpop.f32.mrf.mxu2 }
 0x256   :  { %v1129_v51 = vadd.f32 %v1128_v0, %v1040_v23  ;;  %v1443_v5 = vadd.f32 %v1442_v2, %v3210_v57  ;;  %v1531_v13 = vpop.f32.mrf.mxu3 }
 0x258   :  { %v1194_v6 = vmax.f32 %v1129_v51, 0.0  ;;  %v1532_v29 = vadd.f32 %v1531_v13, %v1443_v5 }
 0x25a   :  { %v1788_v35 = vmax.f32 %v1532_v29, 0.0  ;;  %1484 = vmatmul.bf16.gmra.mxu2 %v3151_v40  ;;  %v3238_v9 = vpack.c.bf16 %v1194_v6, %v1192_v25 }
 0x25b   :  { %1573 = vmatmul.bf16.gmra.mxu3 %v3171_v21  ;;  %v1613_v18 = vpop.f32.mrf.mxu0 }
 0x25c   :  { %v1614_v63 = vadd.f32 %v1613_v18, %v3235_v30  ;;  %v1702_v31 = vpop.f32.mrf.mxu1  ;;  %v3242_v56 = vpack.c.bf16 %v1788_v35, %v1786_v34 }
 0x25d   :  { %v1445_v46 = vpop.f32.mrf.mxu2 }
 0x25e   :  { %v1703_v43 = vadd.f32 %v1702_v31, %v1614_v63  ;;  %v1446_v52 = vadd.f32 %v1445_v46, %v3210_v57  ;;  %v1534_v38 = vpop.f32.mrf.mxu3  ;;  %1652 = vmatmul.bf16.gmra.mxu0 %v3127_v33 }
 0x25f   :  { %1741 = vmatmul.bf16.gmra.mxu1 %v3147_v4 }
 0x260   :  { %v1535_v32 = vadd.f32 %v1534_v38, %v1446_v52  ;;  %v1783_v39 = vmax.f32 %v1703_v43, 0.0 }
 0x262   :  { %v1790_v62 = vmax.f32 %v1535_v32, 0.0 }
 0x263   :  { %v1615_v44 = vpop.f32.mrf.mxu0 }
 0x264   :  { %v1616_v53 = vadd.f32 %v1615_v44, %v3235_v30  ;;  %v1704_v14 = vpop.f32.mrf.mxu1 }
 0x265   :  { %v1447_v10 = vpop.f32.mrf.mxu2 }
 0x266   :  { %v1705_v19 = vadd.f32 %v1704_v14, %v1616_v53  ;;  %v1448_v55 = vadd.f32 %v1447_v10, %v3210_v57  ;;  %v1536_v26 = vpop.f32.mrf.mxu3 }
 0x268   :  { %v1785_v15 = vmax.f32 %v1705_v19, 0.0  ;;  %v1537_v3 = vadd.f32 %v1536_v26, %v1448_v55 }
 0x26a   :  { %v1792_v1 = vmax.f32 %v1537_v3, 0.0  ;;  %1489 = vmatmul.bf16.gmra.mxu2 %v3163_v17  ;;  %v3250_v33 = vpack.c.bf16 %v1785_v15, %v1783_v39 }
 0x26b   :  { %1578 = vmatmul.bf16.gmra.mxu3 %v3183_v24  ;;  %v1618_v4 = vpop.f32.mrf.mxu0 }
 0x26c   :  { %v1619_v8 = vadd.f32 %v1618_v4, %v3235_v30  ;;  %v1707_v22 = vpop.f32.mrf.mxu1  ;;  %v3254_v36 = vpack.c.bf16 %v1792_v1, %v1790_v62 }
 0x26d   :  { %v1450_v12 = vpop.f32.mrf.mxu2 }
 0x26e   :  { %v1708_v20 = vadd.f32 %v1707_v22, %v1619_v8  ;;  %v1451_v27 = vadd.f32 %v1450_v12, %v3210_v57  ;;  %v1539_v58 = vpop.f32.mrf.mxu3  ;;  %1657 = vmatmul.bf16.gmra.mxu0 %v3139_v54 }
 0x26f   :  { %1746 = vmatmul.bf16.gmra.mxu1 %v3159_v28 }
 0x270   :  { %v1540_v45 = vadd.f32 %v1539_v58, %v1451_v27  ;;  %v1787_v2 = vmax.f32 %v1708_v20, 0.0 }
 0x272   :  { %v1794_v13 = vmax.f32 %v1540_v45, 0.0 }
 0x273   :  { %v1620_v42 = vpop.f32.mrf.mxu0 }
 0x274   :  { %v1621_v60 = vadd.f32 %v1620_v42, %v3235_v30  ;;  %v1709_v37 = vpop.f32.mrf.mxu1 }
 0x275   :  { %v1452_v50 = vpop.f32.mrf.mxu2 }
 0x276   :  { %v1710_v49 = vadd.f32 %v1709_v37, %v1621_v60  ;;  %v1453_v23 = vadd.f32 %v1452_v50, %v3210_v57  ;;  %v1541_v0 = vpop.f32.mrf.mxu3 }
 0x278   :  { %v1789_v51 = vmax.f32 %v1710_v49, 0.0  ;;  %v1542_v5 = vadd.f32 %v1541_v0, %v1453_v23 }
 0x27a   :  { %v1796_v25 = vmax.f32 %v1542_v5, 0.0  ;;  %1494 = vmatmul.bf16.gmra.mxu2 %v3175_v61  ;;  %v3262_v54 = vpack.c.bf16 %v1789_v51, %v1787_v2 }
 0x27b   :  { %1583 = vmatmul.bf16.gmra.mxu3 %v3195_v7  ;;  %v1623_v28 = vpop.f32.mrf.mxu0 }
 0x27c   :  { %v1624_v6 = vadd.f32 %v1623_v28, %v3235_v30  ;;  %v1712_v29 = vpop.f32.mrf.mxu1  ;;  %v3266_v34 = vpack.c.bf16 %v1796_v25, %v1794_v13 }
 0x27d   :  { %v1455_v35 = vpop.f32.mrf.mxu2 }
 0x27e   :  { %v1713_v18 = vadd.f32 %v1712_v29, %v1624_v6  ;;  %v1456_v63 = vadd.f32 %v1455_v35, %v3210_v57  ;;  %v1544_v31 = vpop.f32.mrf.mxu3  ;;  %1662 = vmatmul.bf16.gmra.mxu0 %v3151_v40 }
 0x27f   :  { %1751 = vmatmul.bf16.gmra.mxu1 %v3171_v21 }
 0x280   :  { %v3271_v46 = vadd.f32 %v1544_v31, %v1456_v63  ;;  %v1791_v14 = vmax.f32 %v1713_v18, 0.0 }
 0x283   :  { %v1625_v43 = vpop.f32.mrf.mxu0 }
 0x284   :  { %v1626_v52 = vadd.f32 %v1625_v43, %v3235_v30  ;;  %v1714_v38 = vpop.f32.mrf.mxu1 }
 0x285   :  { %v3274_v32 = vpop.f32.mrf.mxu2 }
 0x286   :  { %v1715_v44 = vadd.f32 %v1714_v38, %v1626_v52  ;;  %v3276_v53 = vpop.f32.mrf.mxu3 }
 0x288   :  { %v1793_v10 = vmax.f32 %v1715_v44, 0.0 }
 0x28a   :  { %1499 = vmatmul.bf16.gmra.mxu2 %v3187_v41  ;;  %v3279_v19 = vpack.c.bf16 %v1793_v10, %v1791_v14 }
 0x28b   :  { %1588 = vmatmul.bf16.gmra.mxu3 %v3212_v48  ;;  %v1628_v40 = vpop.f32.mrf.mxu0 }
 0x28c   :  { %v1629_v21 = vadd.f32 %v1628_v40, %v3235_v30  ;;  %v1717_v55 = vpop.f32.mrf.mxu1 }
 0x28d   :  { %v3283_v26 = vpop.f32.mrf.mxu2 }
 0x28e   :  { %v1718_v39 = vadd.f32 %v1717_v55, %v1629_v21  ;;  %v3285_v15 = vpop.f32.mrf.mxu3  ;;  %1667 = vmatmul.bf16.gmra.mxu0 %v3163_v17 }
 0x28f   :  { %1756 = vmatmul.bf16.gmra.mxu1 %v3183_v24 }
 0x290   :  { %v1795_v12 = vmax.f32 %v1718_v39, 0.0 }
 0x293   :  { %v1630_v3 = vpop.f32.mrf.mxu0 }
 0x294   :  { %v1631_v62 = vadd.f32 %v1630_v3, %v3235_v30  ;;  %v1719_v1 = vpop.f32.mrf.mxu1 }
 0x295   :  { %v1462_v4 = vpop.f32.mrf.mxu2 }
 0x296   :  { %v1720_v8 = vadd.f32 %v1719_v1, %v1631_v62  ;;  %v1551_v22 = vpop.f32.mrf.mxu3  ;;  %v1463_v1 = vadd.f32 %v1462_v4, %v3210_v57 }
 0x298   :  { %v1797_v20 = vmax.f32 %v1720_v8, 0.0 }
 0x29a   :  { %1504 = vmatmul.bf16.gmra.mxu2 %v3199_v16  ;;  %v3291_v27 = vpack.c.bf16 %v1797_v20, %v1795_v12  ;;  %v1461_v20 = vadd.f32 %v3283_v26, %v3210_v57 }
 0x29b   :  { %1593 = vmatmul.bf16.gmra.mxu3 %v3224_v59  ;;  %v1633_v58 = vpop.f32.mrf.mxu0 }
 0x29c   :  { %v1634_v17 = vadd.f32 %v1633_v58, %v3235_v30  ;;  %v1722_v45 = vpop.f32.mrf.mxu1 }
 0x29d   :  { %v1465_v24 = vpop.f32.mrf.mxu2 }
 0x29e   :  { %v1723_v42 = vadd.f32 %v1722_v45, %v1634_v17  ;;  %v1554_v60 = vpop.f32.mrf.mxu3  ;;  %1672 = vmatmul.bf16.gmra.mxu0 %v3175_v61  ;;  %v1466_v44 = vadd.f32 %v1465_v24, %v3210_v57  ;;  %v1552_v45 = vadd.f32 %v1551_v22, %v1463_v1 }
 0x29f   :  { %1761 = vmatmul.bf16.gmra.mxu1 %v3195_v7 }
 0x2a0   :  { %v1799_v51 = vmax.f32 %v1723_v42, 0.0  ;;  %v1555_v39 = vadd.f32 %v1554_v60, %v1466_v44  ;;  %v1804_v4 = vmax.f32 %v1552_v45, 0.0 }
 0x2a2   :  { %v1806_v58 = vmax.f32 %v1555_v39, 0.0 }
 0x2a3   :  { %v1635_v37 = vpop.f32.mrf.mxu0 }
 0x2a4   :  { %v1636_v50 = vadd.f32 %v1635_v37, %v3235_v30  ;;  %v1724_v49 = vpop.f32.mrf.mxu1  ;;  %v1550_v37 = vadd.f32 %v3285_v15, %v1461_v20 }
 0x2a5   :  { %v1467_v23 = vpop.f32.mrf.mxu2 }
 0x2a6   :  { %v1725_v0 = vadd.f32 %v1724_v49, %v1636_v50  ;;  %v1556_v2 = vpop.f32.mrf.mxu3  ;;  %v1468_v52 = vadd.f32 %v1467_v23, %v3210_v57  ;;  %v1802_v23 = vmax.f32 %v1550_v37, 0.0 }
 0x2a8   :  { %v1801_v5 = vmax.f32 %v1725_v0, 0.0 }
 0x2aa   :  { %v3298_v13 = vpack.c.bf16 %v1801_v5, %v1799_v51  ;;  %1509 = vmatmul.bf16.gmra.mxu2 %v3216_v47 }
 0x2ab   :  { %1598 = vmatmul.bf16.gmra.mxu3 %v3238_v9  ;;  %v3302_v25 = vpop.f32.mrf.mxu0 }
 0x2ac   :  { %v3304_v61 = vpop.f32.mrf.mxu1 }
 0x2ad   :  { %v1470_v7 = vpop.f32.mrf.mxu2 }
 0x2ae   :  { %v1559_v28 = vpop.f32.mrf.mxu3  ;;  %1677 = vmatmul.bf16.gmra.mxu0 %v3187_v41  ;;  %v1471_v6 = vadd.f32 %v1470_v7, %v3210_v57  ;;  %v1857_v7 = vpack.c.bf16 %v1804_v4, %v1802_v23 }
 0x2af   :  { %1766 = vmatmul.bf16.gmra.mxu1 %v3212_v48  ;;  %v1557_v48 = vadd.f32 %v1556_v2, %v1468_v52 }
 0x2b0   :  { %v1560_v63 = vadd.f32 %v1559_v28, %v1471_v6 }
 0x2b1   :  { %v1808_v8 = vmax.f32 %v1557_v48, 0.0 }
 0x2b2   :  { %v1810_v14 = vmax.f32 %v1560_v63, 0.0 }
 0x2b3   :  { %v3309_v29 = vpop.f32.mrf.mxu0  ;;  %v1859_v24 = vpack.c.bf16 %v1808_v8, %v1806_v58 }
 0x2b4   :  { %v3311_v35 = vpop.f32.mrf.mxu1 }
 0x2b5   :  { %v1472_v18 = vpop.f32.mrf.mxu2 }
 0x2b6   :  { %v1473_v31 = vadd.f32 %v1472_v18, %v3210_v57  ;;  %v1561_v43 = vpop.f32.mrf.mxu3 }
 0x2b8   :  { %v1562_v38 = vadd.f32 %v1561_v43, %v1473_v31  ;;  %v1798_v31 = vmax.f32 %v3271_v46, 0.0 }
 0x2ba   :  { %v1812_v41 = vmax.f32 %v1562_v38, 0.0 }
 0x2bb   :  { %v1643_v10 = vpop.f32.mrf.mxu0 }
 0x2bc   :  { %v1861_v40 = vpack.c.bf16 %v1812_v41, %v1810_v14  ;;  %v3316_v21 = vpop.f32.mrf.mxu1 }
 0x2bd   :  { %v1475_v55 = vpop.f32.mrf.mxu2 }
 0x2be   :  { %v1476_v3 = vadd.f32 %v1475_v55, %v3210_v57  ;;  %v1564_v62 = vpop.f32.mrf.mxu3  ;;  %1682 = vmatmul.bf16.gmra.mxu0 %v3199_v16  ;;  %1889 = vmatpush.bf16.xpose.msrb.mxu2 %v1861_v40 }
 0x2bf   :  { %1771 = vmatmul.bf16.gmra.mxu1 %v3224_v59  ;;  %v1458_v59 = vadd.f32 %v3274_v32, %v3210_v57 }
 0x2c0   :  { %v1565_v12 = vadd.f32 %v1564_v62, %v1476_v3 }
 0x2c1   :  { %v1547_v22 = vadd.f32 %v3276_v53, %v1458_v59 }
 0x2c2   :  { %v1814_v0 = vmax.f32 %v1565_v12, 0.0 }
 0x2c3   :  { %v1645_v17 = vpop.f32.mrf.mxu0  ;;  %v1800_v32 = vmax.f32 %v1547_v22, 0.0 }
 0x2c4   :  { %v1734_v42 = vpop.f32.mrf.mxu1  ;;  %v1646_v41 = vadd.f32 %v1645_v17, %v3235_v30 }
 0x2c5   :  { %v1477_v60 = vpop.f32.mrf.mxu2  ;;  %v1855_v44 = vpack.c.bf16 %v1800_v32, %v1798_v31 }
 0x2c6   :  { %v1478_v16 = vadd.f32 %v1477_v60, %v3210_v57  ;;  %v1566_v50 = vpop.f32.mrf.mxu3  ;;  %1890 = vmatpush.bf16.xpose.msrb.mxu2 %v1859_v24  ;;  %v1735_v46 = vadd.f32 %v1734_v42, %v1646_v41 }
 0x2c8   :  { %v1567_v49 = vadd.f32 %v1566_v50, %v1478_v16  ;;  %v1809_v60 = vmax.f32 %v1735_v46, 0.0 }
 0x2ca   :  { %v1816_v26 = vmax.f32 %v1567_v49, 0.0 }
 0x2cb   :  { %v1648_v2 = vpop.f32.mrf.mxu0 }
 0x2cc   :  { %v3329_v51 = vpack.c.bf16 %v1816_v26, %v1814_v0  ;;  %v1737_v5 = vpop.f32.mrf.mxu1  ;;  %v1649_v18 = vadd.f32 %v1648_v2, %v3235_v30 }
 0x2cd   :  { %v1480_v15 = vpop.f32.mrf.mxu2 }
 0x2ce   :  { %v1481_v28 = vadd.f32 %v1480_v15, %v3210_v57  ;;  %v1569_v6 = vpop.f32.mrf.mxu3  ;;  %1687 = vmatmul.bf16.gmra.mxu0 %v3216_v47  ;;  %1891 = vmatpush.bf16.xpose.msrb.mxu2 %v1857_v7  ;;  %v1738_v43 = vadd.f32 %v1737_v5, %v1649_v18 }
 0x2cf   :  { %1776 = vmatmul.bf16.gmra.mxu1 %v3238_v9  ;;  %v1644_v9 = vadd.f32 %v1643_v10, %v3235_v30  ;;  %v1641_v10 = vadd.f32 %v3309_v29, %v3235_v30 }
 0x2d0   :  { %v1570_v63 = vadd.f32 %v1569_v6, %v1481_v28  ;;  %v1811_v55 = vmax.f32 %v1738_v43, 0.0 }
 0x2d1   :  { %v1733_v20 = vadd.f32 %v3316_v21, %v1644_v9  ;;  %v1639_v21 = vadd.f32 %v3302_v25, %v3235_v30  ;;  %v1730_v4 = vadd.f32 %v3311_v35, %v1641_v10 }
 0x2d2   :  { %v1818_v62 = vmax.f32 %v1570_v63, 0.0 }
 0x2d3   :  { %v1650_v53 = vpop.f32.mrf.mxu0  ;;  %v1807_v50 = vmax.f32 %v1733_v20, 0.0  ;;  %v1728_v0 = vadd.f32 %v3304_v61, %v1639_v21  ;;  %v1805_v22 = vmax.f32 %v1730_v4, 0.0 }
 0x2d4   :  { %v1651_v52 = vadd.f32 %v1650_v53, %v3235_v30  ;;  %v1739_v38 = vpop.f32.mrf.mxu1 }
 0x2d5   :  { %v1482_v14 = vpop.f32.mrf.mxu2  ;;  %v1860_v49 = vpack.c.bf16 %v1809_v60, %v1807_v50  ;;  %v1803_v25 = vmax.f32 %v1728_v0, 0.0 }
 0x2d6   :  { %v1740_v48 = vadd.f32 %v1739_v38, %v1651_v52  ;;  %v1483_v47 = vadd.f32 %v1482_v14, %v3210_v57  ;;  %v1571_v40 = vpop.f32.mrf.mxu3  ;;  %1892 = vmatpush.bf16.xpose.msrb.mxu2 %v1855_v44 }
 0x2d7   :  { %v1858_v6 = vpack.c.bf16 %v1805_v22, %v1803_v25 }
 0x2d8   :  { %v1813_v39 = vmax.f32 %v1740_v48, 0.0  ;;  %v1572_v3 = vadd.f32 %v1571_v40, %v1483_v47 }
 0x2da   :  { %v1862_v1 = vpack.c.bf16 %v1813_v39, %v1811_v55  ;;  %v1820_v8 = vmax.f32 %v1572_v3, 0.0 }
 0x2db   :  { %v1653_v12 = vpop.f32.mrf.mxu0 }
 0x2dc   :  { %v3341_v58 = vpack.c.bf16 %v1820_v8, %v1818_v62  ;;  %v1654_v17 = vadd.f32 %v1653_v12, %v3235_v30  ;;  %v1742_v45 = vpop.f32.mrf.mxu1  ;;  %1902 = vmatpush.bf16.xpose.msrb.mxu3 %v1862_v1 }
 0x2dd   :  { %v1485_v24 = vpop.f32.mrf.mxu2 }
 0x2de   :  { %v1743_v37 = vadd.f32 %v1742_v45, %v1654_v17  ;;  %v1486_v42 = vadd.f32 %v1485_v24, %v3210_v57  ;;  %v1574_v16 = vpop.f32.mrf.mxu3  ;;  %1893 = vmatpush.bf16.xpose.msrb.mxu2 %v3266_v34 }
 0x2e0   :  { %v1575_v59 = vadd.f32 %v1574_v16, %v1486_v42  ;;  %v1815_v15 = vmax.f32 %v1743_v37, 0.0 }
 0x2e2   :  { %v1822_v32 = vmax.f32 %v1575_v59, 0.0 }
 0x2e3   :  { %v1655_v23 = vpop.f32.mrf.mxu0 }
 0x2e4   :  { %v1656_v29 = vadd.f32 %v1655_v23, %v3235_v30  ;;  %v1744_v26 = vpop.f32.mrf.mxu1  ;;  %1903 = vmatpush.bf16.xpose.msrb.mxu3 %v1860_v49 }
 0x2e5   :  { %v1487_v2 = vpop.f32.mrf.mxu2 }
 0x2e6   :  { %v1745_v5 = vadd.f32 %v1744_v26, %v1656_v29  ;;  %v1488_v34 = vadd.f32 %v1487_v2, %v3210_v57  ;;  %v1576_v7 = vpop.f32.mrf.mxu3  ;;  %1894 = vmatpush.bf16.xpose.msrb.mxu2 %v3254_v36 }
 0x2e8   :  { %v1817_v28 = vmax.f32 %v1745_v5, 0.0  ;;  %v1577_v35 = vadd.f32 %v1576_v7, %v1488_v34 }
 0x2ea   :  { %v3355_v18 = vpack.c.bf16 %v1817_v28, %v1815_v15  ;;  %v1824_v61 = vmax.f32 %v1577_v35, 0.0 }
 0x2eb   :  { %v1658_v63 = vpop.f32.mrf.mxu0 }
 0x2ec   :  { %v3357_v31 = vpack.c.bf16 %v1824_v61, %v1822_v32  ;;  %v1659_v53 = vadd.f32 %v1658_v63, %v3235_v30  ;;  %v1747_v43 = vpop.f32.mrf.mxu1  ;;  %1904 = vmatpush.bf16.xpose.msrb.mxu3 %v1858_v6 }
 0x2ed   :  { %v1490_v52 = vpop.f32.mrf.mxu2 }
 0x2ee   :  { %v1748_v38 = vadd.f32 %v1747_v43, %v1659_v53  ;;  %v1491_v36 = vadd.f32 %v1490_v52, %v3210_v57  ;;  %v1579_v44 = vpop.f32.mrf.mxu3  ;;  %1895 = vmatpush.bf16.xpose.msrb.mxu2 %v3242_v56 }
 0x2f0   :  { %v1580_v14 = vadd.f32 %v1579_v44, %v1491_v36  ;;  %v1819_v3 = vmax.f32 %v1748_v38, 0.0 }
 0x2f2   :  { %v1826_v1 = vmax.f32 %v1580_v14, 0.0 }
 0x2f3   :  { %v1660_v41 = vpop.f32.mrf.mxu0 }
 0x2f4   :  { %v1661_v48 = vadd.f32 %v1660_v41, %v3235_v30  ;;  %v1749_v47 = vpop.f32.mrf.mxu1  ;;  %1905 = vmatpush.bf16.xpose.msrb.mxu3 %v3298_v13 }
 0x2f5   :  { %v1492_v40 = vpop.f32.mrf.mxu2 }
 0x2f6   :  { %v1750_v9 = vadd.f32 %v1749_v47, %v1661_v48  ;;  %v1493_v55 = vadd.f32 %v1492_v40, %v3210_v57  ;;  %v1581_v39 = vpop.f32.mrf.mxu3  ;;  %1896 = vmatpush.bf16.xpose.msrb.mxu2 %v3228_v11 }
 0x2f8   :  { %v1821_v46 = vmax.f32 %v1750_v9, 0.0  ;;  %v1582_v62 = vadd.f32 %v1581_v39, %v1493_v55 }
 0x2fa   :  { %v3366_v8 = vpack.c.bf16 %v1821_v46, %v1819_v3  ;;  %v1828_v56 = vmax.f32 %v1582_v62, 0.0 }
 0x2fb   :  { %v1663_v12 = vpop.f32.mrf.mxu0 }
 0x2fc   :  { %v3368_v20 = vpack.c.bf16 %v1828_v56, %v1826_v1  ;;  %v1664_v17 = vadd.f32 %v1663_v12, %v3235_v30  ;;  %v1752_v13 = vpop.f32.mrf.mxu1  ;;  %1906 = vmatpush.bf16.xpose.msrb.mxu3 %v3291_v27 }
 0x2fd   :  { %v1495_v45 = vpop.f32.mrf.mxu2 }
 0x2fe   :  { %v1753_v24 = vadd.f32 %v1752_v13, %v1664_v17  ;;  %v1496_v10 = vadd.f32 %v1495_v45, %v3210_v57  ;;  %v1584_v11 = vpop.f32.mrf.mxu3 }
 0x300   :  { %v1585_v60 = vadd.f32 %v1584_v11, %v1496_v10  ;;  %v1823_v49 = vmax.f32 %v1753_v24, 0.0 }
 0x302   :  { %v1830_v0 = vmax.f32 %v1585_v60, 0.0 }
 0x303   :  { %v1665_v37 = vpop.f32.mrf.mxu0 }
 0x304   :  { %v1666_v42 = vadd.f32 %v1665_v37, %v3235_v30  ;;  %v1754_v16 = vpop.f32.mrf.mxu1  ;;  %1907 = vmatpush.bf16.xpose.msrb.mxu3 %v3279_v19 }
 0x305   :  { %v1497_v21 = vpop.f32.mrf.mxu2 }
 0x306   :  { %v1755_v50 = vadd.f32 %v1754_v16, %v1666_v42  ;;  %v1498_v59 = vadd.f32 %v1497_v21, %v3210_v57  ;;  %v1586_v4 = vpop.f32.mrf.mxu3 }
 0x308   :  { %v1825_v23 = vmax.f32 %v1755_v50, 0.0  ;;  %v1587_v27 = vadd.f32 %v1586_v4, %v1498_v59 }
 0x30a   :  { %v3376_v29 = vpack.c.bf16 %v1825_v23, %v1823_v49  ;;  %v1832_v26 = vmax.f32 %v1587_v27, 0.0 }
 0x30b   :  { %v1668_v2 = vpop.f32.mrf.mxu0 }
 0x30c   :  { %v3378_v22 = vpack.c.bf16 %v1832_v26, %v1830_v0  ;;  %v1669_v5 = vadd.f32 %v1668_v2, %v3235_v30  ;;  %v1757_v34 = vpop.f32.mrf.mxu1  ;;  %1908 = vmatpush.bf16.xpose.msrb.mxu3 %v3262_v54 }
 0x30d   :  { %v1500_v19 = vpop.f32.mrf.mxu2 }
 0x30e   :  { %v1758_v7 = vadd.f32 %v1757_v34, %v1669_v5  ;;  %v1589_v25 = vpop.f32.mrf.mxu3  ;;  %v1501_v26 = vadd.f32 %v1500_v19, %v3210_v57 }
 0x310   :  { %v1827_v63 = vmax.f32 %v1758_v7, 0.0 }
 0x313   :  { %v1670_v15 = vpop.f32.mrf.mxu0 }
 0x314   :  { %v1671_v28 = vadd.f32 %v1670_v15, %v3235_v30  ;;  %v1759_v35 = vpop.f32.mrf.mxu1  ;;  %1909 = vmatpush.bf16.xpose.msrb.mxu3 %v3250_v33 }
 0x315   :  { %v1502_v6 = vpop.f32.mrf.mxu2 }
 0x316   :  { %v1760_v32 = vadd.f32 %v1759_v35, %v1671_v28  ;;  %v1591_v61 = vpop.f32.mrf.mxu3  ;;  %v1503_v27 = vadd.f32 %v1502_v6, %v3210_v57  ;;  %v1590_v28 = vadd.f32 %v1589_v25, %v1501_v26 }
 0x318   :  { %v1829_v53 = vmax.f32 %v1760_v32, 0.0  ;;  %v1592_v34 = vadd.f32 %v1591_v61, %v1503_v27  ;;  %v1834_v32 = vmax.f32 %v1590_v28, 0.0 }
 0x31a   :  { %v3384_v43 = vpack.c.bf16 %v1829_v53, %v1827_v63  ;;  %v1836_v35 = vmax.f32 %v1592_v34, 0.0 }
 0x31b   :  { %v1673_v52 = vpop.f32.mrf.mxu0 }
 0x31c   :  { %v1674_v38 = vadd.f32 %v1673_v52, %v3235_v30  ;;  %v1762_v54 = vpop.f32.mrf.mxu1  ;;  %v1873_v53 = vpack.c.bf16 %v1836_v35, %v1834_v32 }
 0x31d   :  { %v1505_v36 = vpop.f32.mrf.mxu2 }
 0x31e   :  { %v1763_v44 = vadd.f32 %v1762_v54, %v1674_v38  ;;  %v1594_v14 = vpop.f32.mrf.mxu3  ;;  %v1506_v42 = vadd.f32 %v1505_v36, %v3210_v57 }
 0x320   :  { %v1831_v55 = vmax.f32 %v1763_v44, 0.0  ;;  %v1595_v23 = vadd.f32 %v1594_v14, %v1506_v42 }
 0x322   :  { %v1838_v2 = vmax.f32 %v1595_v23, 0.0 }
 0x323   :  { %v1675_v41 = vpop.f32.mrf.mxu0 }
 0x324   :  { %v1676_v48 = vadd.f32 %v1675_v41, %v3235_v30  ;;  %v1764_v47 = vpop.f32.mrf.mxu1 }
 0x325   :  { %v1507_v40 = vpop.f32.mrf.mxu2 }
 0x326   :  { %v1765_v33 = vadd.f32 %v1764_v47, %v1676_v48  ;;  %v1596_v9 = vpop.f32.mrf.mxu3  ;;  %v1508_v60 = vadd.f32 %v1507_v40, %v3210_v57 }
 0x328   :  { %v1833_v39 = vmax.f32 %v1765_v33, 0.0  ;;  %v1597_v59 = vadd.f32 %v1596_v9, %v1508_v60  ;;  %v1846_v9 = vld [vmem:[%s3431_s4] sm:$0xff] }
 0x32a   :  { %v3388_v3 = vpack.c.bf16 %v1833_v39, %v1831_v55  ;;  %v1840_v0 = vmax.f32 %v1597_v59, 0.0  ;;  %v1883_v39 = vunpack.c.l.b16 %v1846_v9 }
 0x32b   :  { %v1678_v46 = vpop.f32.mrf.mxu0 }
 0x32c   :  { %v3390_v62 = vpop.f32.mrf.mxu1  ;;  %v1875_v7 = vpack.c.bf16 %v1840_v0, %v1838_v2  ;;  %v1679_v55 = vadd.f32 %v1678_v46, %v3235_v30 }
 0x32d   :  { %v1510_v1 = vpop.f32.mrf.mxu2 }
 0x32e   :  { %v1599_v56 = vpop.f32.mrf.mxu3  ;;  %v1511_v12 = vadd.f32 %v1510_v1, %v3210_v57  ;;  %v1884_v1 = vunpack.c.h.b16 %v1846_v9 }
 0x330   :  { %v1600_v24 = vadd.f32 %v1599_v56, %v1511_v12 }
 0x332   :  { %v1842_v16 = vmax.f32 %v1600_v24, 0.0  ;;  %v1886_v24 = vpack.c.b16 %v1884_v1, %v1884_v1 }
 0x333   :  { %v1680_v17 = vpop.f32.mrf.mxu0 }
 0x334   :  { %v1769_v13 = vpop.f32.mrf.mxu1  ;;  %v1681_v40 = vadd.f32 %v1680_v17, %v3235_v30  ;;  %1910 = vmatmul.bf16.vlgmr.msrb.gmra.mxu3 %v1886_v24 }
 0x335   :  { %v1512_v45 = vpop.f32.mrf.mxu2 }
 0x336   :  { %v1513_v10 = vadd.f32 %v1512_v45, %v3210_v57  ;;  %v1601_v11 = vpop.f32.mrf.mxu3  ;;  %v1770_v56 = vadd.f32 %v1769_v13, %v1681_v40  ;;  %v1885_v45 = vpack.c.b16 %v1883_v39, %v1883_v39 }
 0x338   :  { %v1602_v37 = vadd.f32 %v1601_v11, %v1513_v10  ;;  %v1768_v10 = vadd.f32 %v3390_v62, %v1679_v55  ;;  %1897 = vmatmul.bf16.vlgmr.msrb.gmra.mxu2 %v1885_v45  ;;  %v1837_v17 = vmax.f32 %v1770_v56, 0.0 }
 0x33a   :  { %v1844_v21 = vmax.f32 %v1602_v37, 0.0 }
 0x33b   :  { %v1683_v50 = vpop.f32.mrf.mxu0 }
 0x33c   :  { %v1877_v4 = vpack.c.bf16 %v1844_v21, %v1842_v16  ;;  %v1772_v49 = vpop.f32.mrf.mxu1  ;;  %v1684_v25 = vadd.f32 %v1683_v50, %v3235_v30 }
 0x33e   :  { %1915 = vmatpush.bf16.xpose.msra.mxu2 %v1877_v4  ;;  %v1773_v47 = vadd.f32 %v1772_v49, %v1684_v25 }
 0x343   :  { %v1685_v5 = vpop.f32.mrf.mxu0 }
 0x344   :  { %v1774_v15 = vpop.f32.mrf.mxu1  ;;  %v1686_v19 = vadd.f32 %v1685_v5, %v3235_v30 }
 0x346   :  { %1916 = vmatpush.bf16.xpose.msra.mxu2 %v1875_v7  ;;  %v1775_v41 = vadd.f32 %v1774_v15, %v1686_v19 }
 0x348   :  { %v1841_v33 = vmax.f32 %v1775_v41, 0.0 }
 0x34b   :  { %v1688_v63 = vpop.f32.mrf.mxu0 }
 0x34c   :  { %v1777_v52 = vpop.f32.mrf.mxu1  ;;  %v1689_v38 = vadd.f32 %v1688_v63, %v3235_v30 }
 0x34e   :  { %1917 = vmatpush.bf16.xpose.msra.mxu2 %v1873_v53  ;;  %v1778_v6 = vadd.f32 %v1777_v52, %v1689_v38 }
 0x350   :  { %v1843_v44 = vmax.f32 %v1778_v6, 0.0 }
 0x353   :  { %v1690_v54 = vpop.f32.mrf.mxu0 }
 0x354   :  { %v1691_v36 = vadd.f32 %v1690_v54, %v3235_v30  ;;  %v1779_v57 = vpop.f32.mrf.mxu1  ;;  %v1879_v30 = vld [vmem:[%s3432_s5 + $0x3] ss:$0 sm:$0xff] }
 0x355   :  { %2367 = vpush %v1879_v30 }
 0x356   :  { %v1780_v61 = vadd.f32 %v1779_v57, %v1691_v36  ;;  %1918 = vmatpush.bf16.xpose.msra.mxu2 %v3378_v22  ;;  %v1839_v22 = vmax.f32 %v1773_v47, 0.0 }
 0x358   :  { %v1845_v14 = vmax.f32 %v1780_v61, 0.0  ;;  %v1876_v12 = vpack.c.bf16 %v1841_v33, %v1839_v22 }
 0x35a   :  { %v1878_v48 = vpack.c.bf16 %v1845_v14, %v1843_v44 }
 0x35c   :  { %1928 = vmatpush.bf16.xpose.msra.mxu3 %v1878_v48 }
 0x35e   :  { %1919 = vmatpush.bf16.xpose.msra.mxu2 %v3368_v20  ;;  %v1835_v20 = vmax.f32 %v1768_v10, 0.0 }
 0x360   :  { %v1874_v11 = vpack.c.bf16 %v1837_v17, %v1835_v20 }
 0x364   :  { %1929 = vmatpush.bf16.xpose.msra.mxu3 %v1876_v12 }
 0x366   :  { %1920 = vmatpush.bf16.xpose.msra.mxu2 %v3357_v31 }
 0x36c   :  { %1930 = vmatpush.bf16.xpose.msra.mxu3 %v1874_v11 }
 0x36e   :  { %1921 = vmatpush.bf16.xpose.msra.mxu2 %v3341_v58 }
 0x374   :  { %1931 = vmatpush.bf16.xpose.msra.mxu3 %v3388_v3 }
 0x376   :  { %1922 = vmatpush.bf16.xpose.msra.mxu2 %v3329_v51 }
 0x37c   :  { %1932 = vmatpush.bf16.xpose.msra.mxu3 %v3384_v43 }
 0x37d   :  { %1923 = vmatmul.bf16.vlgmr.msra.gmra.mxu2 %v1885_v45 }
 0x384   :  { %1933 = vmatpush.bf16.xpose.msra.mxu3 %v3376_v29 }
 0x386   :  { %s2368_s23 = spop %2367 }
 0x387   :  { %v1881_v58 = vstv %s2368_s23 }
 0x38c   :  { %1934 = vmatpush.bf16.xpose.msra.mxu3 %v3366_v8 }
 0x394   :  { %1935 = vmatpush.bf16.xpose.msra.mxu3 %v3355_v18 }
 0x39b   :  { %1936 = vmatmul.bf16.vlgmr.msra.gmra.mxu3 %v1886_v24 }
 0x3b7   :  { %v1911_v3 = vpop.f32.mrf.mxu3 }
 0x3bb   :  { %v1898_v31 = vpop.f32.mrf.mxu2 }
 0x3bc   :  { %v1899_v51 = vadd.f32 %v1898_v31, %v1881_v58 }
 0x3be   :  { %v1912_v46 = vadd.f32 %v1911_v3, %v1899_v51 }
 0x3bf   :  { %v1913_v62 = vpop.f32.mrf.mxu3 }
 0x3c0   :  { %1941 = vst [vmem:[%s3433_s6] sm:$0xff] %v1912_v46 }
 0x3c3   :  { %v1900_v43 = vpop.f32.mrf.mxu2 }
 0x400   :  { %v1924_v13 = vpop.f32.mrf.mxu2 }
 0x401   :  { %v1925_v29 = vadd.f32 %v1924_v13, %v1881_v58 }
 0x408   :  { %v1926_v60 = vpop.f32.mrf.mxu2 }
 0x41e   :  { %v1937_v37 = vpop.f32.mrf.mxu3 }
 0x41f   :  { %v1938_v8 = vadd.f32 %v1937_v37, %v1925_v29 }
 0x421   :  { %1942 = vst [vmem:[%s3433_s6 + $0x8] sm:$0xff] %v1938_v8 }
 0x426   :  { %v1939_v18 = vpop.f32.mrf.mxu3 }
 0x427   :  { %1947 = vsyncpa [#allocation4], 1 }
 0x428   :  { %1948 = vsyncpa [#allocation6], 1 }

</bundles_post_ra>
